<compile_context>
chip_gen: v5e
topology: v5e:2x2
jax: 0.10.0
libtpu: 0.0.40
codegen_flags: <defaults>
</compile_context>

<pallas_src>
import jax
import jax.numpy as jnp
from jax.experimental import pallas as pl
from jax.experimental.pallas import tpu as pltpu

N_VOX = 8000            # 20 * 20 * 20
ROWS, COLS = 64, 125    # 64 * 125 == 8000 exactly -> no padding, no mask


def _loss_kernel(p_ref, t_ref, out_ref):
    p = p_ref[...]      # (64, 125) f32 predictions
    t = t_ref[...]      # (64, 125) f32 targets

    # ---- weighted cross entropy (myCrossEntropy) ----
    pc = jnp.clip(p, 0.0, 1.0)
    # target = clamp(t, 0, 1).long()  -> 1 iff t >= 1, else 0
    target = (t >= 1.0).astype(jnp.float32)
    # logits are [1-pc, pc]; nll = logsumexp - logits[target] = softplus(d)
    # with d = (1 - 2*target) * (2*pc - 1) in [-1, 1], so 1 + exp(d) >= 1.37
    # and a plain log is exact -- no max/abs/select needed.
    d = (1.0 - 2.0 * target) * (2.0 * pc - 1.0)
    nll = jnp.log(1.0 + jnp.exp(d))
    w = 0.001 + 0.999 * target                      # class weights [0.001, 1]
    # Fold into (1, COLS) sublane-partials immediately (tight live ranges).
    ce_row = jnp.sum(w * nll, axis=0, keepdims=True)
    pos_row = jnp.sum(target, axis=0, keepdims=True)

    # ---- masked MSE terms ----
    diff = p - t
    sq = diff * diff
    mb = (t > 0.0).astype(jnp.float32)              # b = nonzero(clamp(t, 0))
    md = (t > 2000.0).astype(jnp.float32)           # d = nonzero(clamp(t-2000, 0))
    sq_row = jnp.sum(sq, axis=0, keepdims=True)             # full-grid sum sq
    mbsq_row = jnp.sum(mb * sq, axis=0, keepdims=True)      # spur numerator
    mb_row = jnp.sum(mb, axis=0, keepdims=True)             # spur count
    mdsq_row = jnp.sum(md * sq, axis=0, keepdims=True)      # max numerator
    md_row = jnp.sum(md, axis=0, keepdims=True)             # max count

    # One cheap single-vreg lane reduction per quantity.
    ce_num = jnp.sum(ce_row)
    n_pos = jnp.sum(pos_row)
    s_sq = jnp.sum(sq_row)
    s_mb_sq = jnp.sum(mbsq_row)
    s_mb = jnp.sum(mb_row)
    s_md_sq = jnp.sum(mdsq_row)
    s_md = jnp.sum(md_row)

    ce_den = 0.001 * N_VOX + 0.999 * n_pos          # == sum of class weights

    # ---- fused scalar finalization ----
    ce_loss = (ce_num / ce_den) * (10.0 ** 8) * 1.1
    loss_spur = s_mb_sq / s_mb * 10000.0            # mse(p[b], t[b]) * 10000
    loss_b = (s_sq - s_mb_sq) / (float(N_VOX) - s_mb) * 25000.0   # mse(p[c], t[c]) * 25000
    loss_max = s_md_sq / s_md * 1000.0              # mse(p[d], t[d]) * 1000

    out_ref[0] = ce_loss + loss_b + loss_spur + loss_max


_loss_call = pl.pallas_call(
    _loss_kernel,
    out_shape=jax.ShapeDtypeStruct((1,), jnp.float32),
    in_specs=[
        pl.BlockSpec(memory_space=pltpu.MemorySpace.VMEM),
        pl.BlockSpec(memory_space=pltpu.MemorySpace.VMEM),
    ],
    out_specs=pl.BlockSpec(memory_space=pltpu.MemorySpace.SMEM),
    cost_estimate=pl.CostEstimate(
        flops=250_000,            # ~30 VPU ops per voxel
        transcendentals=16_000,   # exp + log per voxel
        bytes_accessed=2 * N_VOX * 4 + 4,
    ),
)


def my_loss(p, t, koor=None, sigma=1.0, a=1.0):
    """JAX/Pallas equivalent of MyLoss(sigma, a).forward(p, t, koor).

    p:    (8000,)  predicted voxel values
    t:    (1, 8000) target voxel values
    koor: unused by the forward math (kept for signature parity)
    """
    del koor, sigma, a
    # Free reshapes of the contiguous 8000-element vectors; no HBM roundtrip.
    p2 = p.astype(jnp.float32).reshape(ROWS, COLS)
    t2 = t[0].astype(jnp.float32).reshape(ROWS, COLS)

    # TODO(synk): Wass_xy (Sinkhorn on nonzero point clouds, geomloss
    # SamplesLoss) omitted -- no clean Pallas equivalent; contributes 0 here.
    # For batched evaluation, add a leading "parallel" grid axis so v7x can
    # shard across both TensorCores; single-sample use stays grid-less.
    return _loss_call(p2, t2)[0]


def _loss_ref(p, t0):
    """Pure-jnp reference of the same scalar path (for a correctness check)."""
    pc = jnp.clip(p, 0.0, 1.0)
    target = (t0 >= 1.0).astype(jnp.float32)
    d = (1.0 - 2.0 * target) * (2.0 * pc - 1.0)
    nll = jnp.log1p(jnp.exp(d))
    w = 0.001 + 0.999 * target
    ce = jnp.sum(w * nll) / jnp.sum(w) * (10.0 ** 8) * 1.1
    sq = (p - t0) ** 2
    mb = t0 > 0.0
    md = t0 > 2000.0
    loss_spur = jnp.sum(jnp.where(mb, sq, 0.0)) / jnp.sum(mb) * 10000.0
    loss_b = jnp.sum(jnp.where(mb, 0.0, sq)) / jnp.sum(~mb) * 25000.0
    loss_max = jnp.sum(jnp.where(md, sq, 0.0)) / jnp.sum(md) * 1000.0
    return ce + loss_b + loss_spur + loss_max


if __name__ == "__main__":
    key = jax.random.PRNGKey(0)
    kp, kt1, kt2 = jax.random.split(key, 3)

    # Predictions: positive values in [0, 3000)
    p = jax.random.uniform(kp, (N_VOX,), jnp.float32) * 3000.0

    # Targets: sparse voxel grid — ~10% of voxels active with values in [0, 3000)
    active = jax.random.uniform(kt1, (N_VOX,), jnp.float32) < 0.1
    t_vals = jax.random.uniform(kt2, (N_VOX,), jnp.float32) * 3000.0
    t0 = jnp.where(active, t_vals, 0.0)
    # Guarantee at least one voxel > 2000 so the loss_max mask is non-empty.
    t0 = t0.at[5].set(2500.0)
    t = t0[None, :]                     # shape (1, 8000), matches t[0] usage

    koor = jax.random.uniform(key, (N_VOX, 3), jnp.float32)  # unused

    out = jax.jit(my_loss)(p, t, koor)
    jax.block_until_ready(out)

    ref = _loss_ref(p.astype(jnp.float32), t0.astype(jnp.float32))
    assert jnp.isfinite(out)
    assert jnp.allclose(out, ref, rtol=1e-3), (out, ref)
    print("KERNEL_OK")
</pallas_src>

<mosaic_0001>
module attributes {stable_mosaic.version = 11 : i64} {
  func.func @_loss_kernel(%arg0: memref<64x125xf32, #tpu.memory_space<vmem>>, %arg1: memref<64x125xf32, #tpu.memory_space<vmem>>, %arg2: memref<1xf32, #tpu.memory_space<smem>>) attributes {dimension_semantics = [], scalar_prefetch = 0 : i64, scratch_operands = 0 : i64, tpu.core_type = #tpu.core_type<tc>} {
    %c0 = arith.constant 0 : index
    %c0_0 = arith.constant 0 : index
    %0 = vector.load %arg0[%c0, %c0_0] : memref<64x125xf32, #tpu.memory_space<vmem>>, vector<64x125xf32>
    %c0_1 = arith.constant 0 : index
    %c0_2 = arith.constant 0 : index
    %1 = vector.load %arg1[%c0_1, %c0_2] : memref<64x125xf32, #tpu.memory_space<vmem>>, vector<64x125xf32>
    %cst = arith.constant 0.000000e+00 : f32
    %cst_3 = arith.constant 1.000000e+00 : f32
    %2 = vector.broadcast %cst : f32 to vector<64x125xf32>
    %3 = arith.maximumf %2, %0 : vector<64x125xf32>
    %4 = vector.broadcast %cst_3 : f32 to vector<64x125xf32>
    %5 = arith.minimumf %4, %3 : vector<64x125xf32>
    %cst_4 = arith.constant 1.000000e+00 : f32
    %6 = vector.broadcast %cst_4 : f32 to vector<64x125xf32>
    %7 = arith.cmpf oge, %1, %6 : vector<64x125xf32>
    %8 = arith.extui %7 : vector<64x125xi1> to vector<64x125xi32>
    %9 = arith.sitofp %8 : vector<64x125xi32> to vector<64x125xf32>
    %cst_5 = arith.constant 2.000000e+00 : f32
    %10 = vector.broadcast %cst_5 : f32 to vector<64x125xf32>
    %11 = arith.mulf %10, %9 : vector<64x125xf32>
    %cst_6 = arith.constant 1.000000e+00 : f32
    %12 = vector.broadcast %cst_6 : f32 to vector<64x125xf32>
    %13 = arith.subf %12, %11 : vector<64x125xf32>
    %cst_7 = arith.constant 2.000000e+00 : f32
    %14 = vector.broadcast %cst_7 : f32 to vector<64x125xf32>
    %15 = arith.mulf %14, %5 : vector<64x125xf32>
    %cst_8 = arith.constant 1.000000e+00 : f32
    %16 = vector.broadcast %cst_8 : f32 to vector<64x125xf32>
    %17 = arith.subf %15, %16 : vector<64x125xf32>
    %18 = arith.mulf %13, %17 : vector<64x125xf32>
    %19 = math.exp %18 : vector<64x125xf32>
    %cst_9 = arith.constant 1.000000e+00 : f32
    %20 = vector.broadcast %cst_9 : f32 to vector<64x125xf32>
    %21 = arith.addf %20, %19 : vector<64x125xf32>
    %22 = math.log %21 : vector<64x125xf32>
    %cst_10 = arith.constant 9.990000e-01 : f32
    %23 = vector.broadcast %cst_10 : f32 to vector<64x125xf32>
    %24 = arith.mulf %23, %9 : vector<64x125xf32>
    %cst_11 = arith.constant 1.000000e-03 : f32
    %25 = vector.broadcast %cst_11 : f32 to vector<64x125xf32>
    %26 = arith.addf %25, %24 : vector<64x125xf32>
    %27 = arith.mulf %26, %22 : vector<64x125xf32>
    %cst_12 = arith.constant dense<0.000000e+00> : vector<125xf32>
    %28 = vector.multi_reduction <add>, %27, %cst_12 [0] : vector<64x125xf32> to vector<125xf32>
    %29 = vector.shape_cast %28 : vector<125xf32> to vector<1x125xf32>
    %cst_13 = arith.constant dense<0.000000e+00> : vector<125xf32>
    %30 = vector.multi_reduction <add>, %9, %cst_13 [0] : vector<64x125xf32> to vector<125xf32>
    %31 = vector.shape_cast %30 : vector<125xf32> to vector<1x125xf32>
    %32 = arith.subf %0, %1 : vector<64x125xf32>
    %33 = arith.mulf %32, %32 : vector<64x125xf32>
    %cst_14 = arith.constant 0.000000e+00 : f32
    %34 = vector.broadcast %cst_14 : f32 to vector<64x125xf32>
    %35 = arith.cmpf ogt, %1, %34 : vector<64x125xf32>
    %36 = arith.extui %35 : vector<64x125xi1> to vector<64x125xi32>
    %37 = arith.sitofp %36 : vector<64x125xi32> to vector<64x125xf32>
    %cst_15 = arith.constant 2.000000e+03 : f32
    %38 = vector.broadcast %cst_15 : f32 to vector<64x125xf32>
    %39 = arith.cmpf ogt, %1, %38 : vector<64x125xf32>
    %40 = arith.extui %39 : vector<64x125xi1> to vector<64x125xi32>
    %41 = arith.sitofp %40 : vector<64x125xi32> to vector<64x125xf32>
    %cst_16 = arith.constant dense<0.000000e+00> : vector<125xf32>
    %42 = vector.multi_reduction <add>, %33, %cst_16 [0] : vector<64x125xf32> to vector<125xf32>
    %43 = vector.shape_cast %42 : vector<125xf32> to vector<1x125xf32>
    %44 = arith.mulf %37, %33 : vector<64x125xf32>
    %cst_17 = arith.constant dense<0.000000e+00> : vector<125xf32>
    %45 = vector.multi_reduction <add>, %44, %cst_17 [0] : vector<64x125xf32> to vector<125xf32>
    %46 = vector.shape_cast %45 : vector<125xf32> to vector<1x125xf32>
    %cst_18 = arith.constant dense<0.000000e+00> : vector<125xf32>
    %47 = vector.multi_reduction <add>, %37, %cst_18 [0] : vector<64x125xf32> to vector<125xf32>
    %48 = vector.shape_cast %47 : vector<125xf32> to vector<1x125xf32>
    %49 = arith.mulf %41, %33 : vector<64x125xf32>
    %cst_19 = arith.constant dense<0.000000e+00> : vector<125xf32>
    %50 = vector.multi_reduction <add>, %49, %cst_19 [0] : vector<64x125xf32> to vector<125xf32>
    %51 = vector.shape_cast %50 : vector<125xf32> to vector<1x125xf32>
    %cst_20 = arith.constant dense<0.000000e+00> : vector<125xf32>
    %52 = vector.multi_reduction <add>, %41, %cst_20 [0] : vector<64x125xf32> to vector<125xf32>
    %53 = vector.shape_cast %52 : vector<125xf32> to vector<1x125xf32>
    %54 = vector.shape_cast %29 : vector<1x125xf32> to vector<1x1x125xf32>
    %cst_21 = arith.constant dense<0.000000e+00> : vector<1xf32>
    %55 = vector.multi_reduction <add>, %54, %cst_21 [1, 2] : vector<1x1x125xf32> to vector<1xf32>
    %56 = vector.shape_cast %55 : vector<1xf32> to vector<1x1x1xf32>
    %57 = vector.extract %56[0, 0, 0] : f32 from vector<1x1x1xf32>
    %58 = vector.shape_cast %31 : vector<1x125xf32> to vector<1x1x125xf32>
    %cst_22 = arith.constant dense<0.000000e+00> : vector<1xf32>
    %59 = vector.multi_reduction <add>, %58, %cst_22 [1, 2] : vector<1x1x125xf32> to vector<1xf32>
    %60 = vector.shape_cast %59 : vector<1xf32> to vector<1x1x1xf32>
    %61 = vector.extract %60[0, 0, 0] : f32 from vector<1x1x1xf32>
    %62 = vector.shape_cast %43 : vector<1x125xf32> to vector<1x1x125xf32>
    %cst_23 = arith.constant dense<0.000000e+00> : vector<1xf32>
    %63 = vector.multi_reduction <add>, %62, %cst_23 [1, 2] : vector<1x1x125xf32> to vector<1xf32>
    %64 = vector.shape_cast %63 : vector<1xf32> to vector<1x1x1xf32>
    %65 = vector.extract %64[0, 0, 0] : f32 from vector<1x1x1xf32>
    %66 = vector.shape_cast %46 : vector<1x125xf32> to vector<1x1x125xf32>
    %cst_24 = arith.constant dense<0.000000e+00> : vector<1xf32>
    %67 = vector.multi_reduction <add>, %66, %cst_24 [1, 2] : vector<1x1x125xf32> to vector<1xf32>
    %68 = vector.shape_cast %67 : vector<1xf32> to vector<1x1x1xf32>
    %69 = vector.extract %68[0, 0, 0] : f32 from vector<1x1x1xf32>
    %70 = vector.shape_cast %48 : vector<1x125xf32> to vector<1x1x125xf32>
    %cst_25 = arith.constant dense<0.000000e+00> : vector<1xf32>
    %71 = vector.multi_reduction <add>, %70, %cst_25 [1, 2] : vector<1x1x125xf32> to vector<1xf32>
    %72 = vector.shape_cast %71 : vector<1xf32> to vector<1x1x1xf32>
    %73 = vector.extract %72[0, 0, 0] : f32 from vector<1x1x1xf32>
    %74 = vector.shape_cast %51 : vector<1x125xf32> to vector<1x1x125xf32>
    %cst_26 = arith.constant dense<0.000000e+00> : vector<1xf32>
    %75 = vector.multi_reduction <add>, %74, %cst_26 [1, 2] : vector<1x1x125xf32> to vector<1xf32>
    %76 = vector.shape_cast %75 : vector<1xf32> to vector<1x1x1xf32>
    %77 = vector.extract %76[0, 0, 0] : f32 from vector<1x1x1xf32>
    %78 = vector.shape_cast %53 : vector<1x125xf32> to vector<1x1x125xf32>
    %cst_27 = arith.constant dense<0.000000e+00> : vector<1xf32>
    %79 = vector.multi_reduction <add>, %78, %cst_27 [1, 2] : vector<1x1x125xf32> to vector<1xf32>
    %80 = vector.shape_cast %79 : vector<1xf32> to vector<1x1x1xf32>
    %81 = vector.extract %80[0, 0, 0] : f32 from vector<1x1x1xf32>
    %cst_28 = arith.constant 9.990000e-01 : f32
    %82 = arith.mulf %cst_28, %61 : f32
    %cst_29 = arith.constant 8.000000e+00 : f32
    %83 = arith.addf %cst_29, %82 : f32
    %84 = arith.divf %57, %83 : f32
    %cst_30 = arith.constant 1.000000e+08 : f32
    %85 = arith.mulf %84, %cst_30 : f32
    %cst_31 = arith.constant 1.100000e+00 : f32
    %86 = arith.mulf %85, %cst_31 : f32
    %87 = arith.divf %69, %73 : f32
    %cst_32 = arith.constant 1.000000e+04 : f32
    %88 = arith.mulf %87, %cst_32 : f32
    %89 = arith.subf %65, %69 : f32
    %cst_33 = arith.constant 8.000000e+03 : f32
    %90 = arith.subf %cst_33, %73 : f32
    %91 = arith.divf %89, %90 : f32
    %cst_34 = arith.constant 2.500000e+04 : f32
    %92 = arith.mulf %91, %cst_34 : f32
    %93 = arith.divf %77, %81 : f32
    %cst_35 = arith.constant 1.000000e+03 : f32
    %94 = arith.mulf %93, %cst_35 : f32
    %95 = arith.addf %86, %92 : f32
    %96 = arith.addf %95, %88 : f32
    %97 = arith.addf %96, %94 : f32
    %c0_36 = arith.constant 0 : index
    %98 = memref.load %arg2[%c0_36] : memref<1xf32, #tpu.memory_space<smem>>
    memref.store %97, %arg2[%c0_36] : memref<1xf32, #tpu.memory_space<smem>>
    return
  }
}

</mosaic_0001>

<bundles_post_ra>
// kernel: squeeze.2
= control target key start
LH: loop header
LB: loop body
LE: loop exit
PB: predicated region body
PF: predicated region fallthrough
CT: control target
= control target key end

     0   :  { %vm30_vm0 = vcmask 64512   ;;  %s1191_s12 = smov 126   ;;  %s1192_s13 = smov 120   ;;  %vm16_vm1 = vcmask 39936   ;;  %vm44_vm2 = vcmask 89088   ;;  %vm58_vm3 = vcmask 113664   ;;  %s2046_s0 = inlined_call_operand.vmem [shape: f32[8000], index: 0, kind: input, shape index: {}]   ;;  %s2047_s1 = inlined_call_operand.vmem [shape: f32[64,125], index: 1, kind: output, shape index: {}]  }
   0x1   :  { %v879_v0 = vld [vmem:[%s2046_s0 + $0x29] sm:$0x1]   ;;  %v885_v1 = vld [vmem:[%s2046_s0 + $0x27] sm:$0x1]   ;;  %v886_v2 = vld [vmem:[%s2046_s0 + $0x28] sm:$0x1]  }
   0x2   :  { %7 = vrot.lane.b32.xlu0 %v879_v0, %s1191_s12  ;;  %v31_v3 = vsel %vm30_vm0, %v886_v2, %v885_v1  ;;  %v881_v4 = vld [vmem:[%s2046_s0 + $0x28] sm:$0x1]   ;;  %v882_v5 = vld [vmem:[%s2046_s0 + $0x29] sm:$0x1]   ;;  %v889_v6 = vld [vmem:[%s2046_s0 + $0x26] sm:$0x1]  }
   0x3   :  { %32 = vrot.lane.b32.xlu1 %v31_v3, %s1192_s13  ;;  %v890_v7 = vld [vmem:[%s2046_s0 + $0x27] sm:$0x1]   ;;  %v893_v8 = vld [vmem:[%s2046_s0 + $0x25] sm:$0x1]   ;;  %v894_v9 = vld [vmem:[%s2046_s0 + $0x26] sm:$0x1]   ;;  %v17_v10 = vsel %vm16_vm1, %v882_v5, %v881_v4 }
   0x4   :  { %v59_v11 = vsel %vm58_vm3, %v894_v9, %v893_v8  ;;  %v45_v12 = vsel %vm44_vm2, %v890_v7, %v889_v6  ;;  %s1193_s26 = smov 114   ;;  %s1194_s27 = smov 123   ;;  %v897_v13 = vld [vmem:[%s2046_s0 + $0x24] sm:$0x1]   ;;  %v898_v14 = vld [vmem:[%s2046_s0 + $0x25] sm:$0x1]  }
   0x5   :  { %60 = vrot.lane.b32.xlu2 %v59_v11, %s1193_s26  ;;  %vm72_vm4 = vcmask 138240   ;;  %s1195_s3 = smov 117   ;;  %v901_v15 = vld [vmem:[%s2046_s0 + $0x23] sm:$0x1]   ;;  %v902_v16 = vld [vmem:[%s2046_s0 + $0x24] sm:$0x1]  }
   0x6   :  { %vm86_vm5 = vcmask 162816   ;;  %v905_v17 = vld [vmem:[%s2046_s0 + $0x22] sm:$0x1]   ;;  %v906_v18 = vld [vmem:[%s2046_s0 + $0x23] sm:$0x1]   ;;  %vm100_vm6 = vcmask 187392   ;;  %v73_v19 = vsel %vm72_vm4, %v898_v14, %v897_v13 }
   0x7   :  { %v87_v20 = vsel %vm86_vm5, %v902_v16, %v901_v15  ;;  %v101_v21 = vsel %vm100_vm6, %v906_v18, %v905_v17  ;;  %s1196_s12 = smov 111   ;;  %s1197_s13 = smov 108   ;;  %v909_v22 = vld [vmem:[%s2046_s0 + $0x21] sm:$0x1]   ;;  %v910_v23 = vld [vmem:[%s2046_s0 + $0x22] sm:$0x1]  }
   0x8   :  { %vm114_vm7 = vcmask 211968   ;;  %s1198_s18 = smov 105   ;;  %v913_v24 = vld [vmem:[%s2046_s0 + $0x20] sm:$0x1]   ;;  %v914_v25 = vld [vmem:[%s2046_s0 + $0x21] sm:$0x1]  }
   0x9   :  { %vm128_vm8 = vcmask 236544   ;;  %v917_v26 = vld [vmem:[%s2046_s0 + $0x1f] sm:$0x1]   ;;  %v918_v27 = vld [vmem:[%s2046_s0 + $0x20] sm:$0x1]   ;;  %vm142_vm9 = vcmask 261120   ;;  %v115_v28 = vsel %vm114_vm7, %v910_v23, %v909_v22 }
   0xa   :  { %18 = vrot.lane.b32.xlu0 %v17_v10, %s1194_s27  ;;  %v129_v29 = vsel %vm128_vm8, %v914_v25, %v913_v24  ;;  %v143_v30 = vsel %vm142_vm9, %v918_v27, %v917_v26  ;;  %s1199_s27 = smov 102   ;;  %s1200_s28 = smov 99   ;;  %v921_v31 = vld [vmem:[%s2046_s0 + $0x1e] sm:$0x1]   ;;  %v922_v32 = vld [vmem:[%s2046_s0 + $0x1f] sm:$0x1]  }
   0xb   :  { %46 = vrot.lane.b32.xlu1 %v45_v12, %s1195_s3  ;;  %vm156_vm10 = vcmask 285696   ;;  %s1201_s4 = smov 96   ;;  %v925_v33 = vld [vmem:[%s2046_s0 + $0x1d] sm:$0x1]   ;;  %v926_v34 = vld [vmem:[%s2046_s0 + $0x1e] sm:$0x1]  }
   0xc   :  { %vm170_vm11 = vcmask 310272   ;;  %v929_v35 = vld [vmem:[%s2046_s0 + $0x1c] sm:$0x1]   ;;  %v930_v36 = vld [vmem:[%s2046_s0 + $0x1d] sm:$0x1]   ;;  %vm184_vm12 = vcmask 334848   ;;  %v157_v37 = vsel %vm156_vm10, %v922_v32, %v921_v31 }
   0xd   :  { %74 = vrot.lane.b32.xlu2 %v73_v19, %s1196_s12  ;;  %v171_v38 = vsel %vm170_vm11, %v926_v34, %v925_v33  ;;  %v185_v39 = vsel %vm184_vm12, %v930_v36, %v929_v35  ;;  %s1203_s14 = smov 90   ;;  %v933_v40 = vld [vmem:[%s2046_s0 + $0x1b] sm:$0x1]   ;;  %v934_v41 = vld [vmem:[%s2046_s0 + $0x1c] sm:$0x1]   ;;  %vm198_vm13 = vcmask 359424  }
   0xe   :  { %s1204_s19 = smov 87   ;;  %v937_v42 = vld [vmem:[%s2046_s0 + $0x1a] sm:$0x1]   ;;  %v938_v43 = vld [vmem:[%s2046_s0 + $0x1b] sm:$0x1]   ;;  %vm212_vm14 = vcmask 384000   ;;  %v199_v46 = vsel %vm198_vm13, %v934_v41, %v933_v40 }
   0xf   :  { %v941_v44 = vld [vmem:[%s2046_s0 + $0x19] sm:$0x1]   ;;  %v942_v45 = vld [vmem:[%s2046_s0 + $0x1a] sm:$0x1]   ;;  %vm226_vm15 = vcmask 408576   ;;  %v213_v47 = vsel %vm212_vm14, %v938_v43, %v937_v42  ;;  %s1206_s29 = smov 81  }
  0x10   :  { %v227_v48 = vsel %vm226_vm15, %v942_v45, %v941_v44  ;;  %v945_v49 = vld [vmem:[%s2046_s0 + $0x18] sm:$0x1]   ;;  %v946_v50 = vld [vmem:[%s2046_s0 + $0x19] sm:$0x1]   ;;  %vm240_vm0 = vcmask 433152   ;;  %s1207_s5 = smov 78  }
  0x11   :  { %v949_v51 = vld [vmem:[%s2046_s0 + $0x17] sm:$0x1]   ;;  %v950_v52 = vld [vmem:[%s2046_s0 + $0x18] sm:$0x1]   ;;  %vm254_vm1 = vcmask 457728   ;;  %vm268_vm2 = vcmask 482304   ;;  %v241_v55 = vsel %vm240_vm0, %v946_v50, %v945_v49 }
  0x12   :  { %88 = vrot.lane.b32.xlu0 %v87_v20, %s1197_s13  ;;  %s1202_s13 = smov 93   ;;  %v953_v53 = vld [vmem:[%s2046_s0 + $0x16] sm:$0x1]   ;;  %v954_v54 = vld [vmem:[%s2046_s0 + $0x17] sm:$0x1]   ;;  %v255_v56 = vsel %vm254_vm1, %v950_v52, %v949_v51  ;;  %s1209_s15 = smov 72  }
  0x13   :  { %102 = vrot.lane.b32.xlu1 %v101_v21, %s1198_s18  ;;  %v269_v57 = vsel %vm268_vm2, %v954_v54, %v953_v53  ;;  %v957_v58 = vld [vmem:[%s2046_s0 + $0x15] sm:$0x1]   ;;  %v958_v59 = vld [vmem:[%s2046_s0 + $0x16] sm:$0x1]   ;;  %vm282_vm3 = vcmask 506880   ;;  %s1210_s20 = smov 69  }
  0x14   :  { %v961_v60 = vld [vmem:[%s2046_s0 + $0x14] sm:$0x1]   ;;  %v962_v61 = vld [vmem:[%s2046_s0 + $0x15] sm:$0x1]   ;;  %vm296_vm4 = vcmask 531456   ;;  %vm310_vm5 = vcmask 547840   ;;  %v283_v0 = vsel %vm282_vm3, %v958_v59, %v957_v58 }
  0x15   :  { %116 = vrot.lane.b32.xlu2 %v115_v28, %s1199_s27  ;;  %v965_v62 = vld [vmem:[%s2046_s0 + $0x3d] sm:$0x1]   ;;  %v966_v63 = vld [vmem:[%s2046_s0 + $0x3e] sm:$0x1]   ;;  %v297_v1 = vsel %vm296_vm4, %v962_v61, %v961_v60  ;;  %s1212_s30 = smov 63   ;;  %vm324_vm6 = vcmask 556032  }
  0x16   :  { %v311_v2 = vsel %vm310_vm5, %v966_v63, %v965_v62  ;;  %v969_v3 = vld [vmem:[%s2046_s0 + $0x13] sm:$0x1]   ;;  %v970_v4 = vld [vmem:[%s2046_s0 + $0x14] sm:$0x1]   ;;  %s1213_s6 = smov 61   ;;  %vm338_vm7 = vcmask 572416  }
  0x17   :  { %v973_v5 = vld [vmem:[%s2046_s0 + $0x3c] sm:$0x1]   ;;  %v974_v6 = vld [vmem:[%s2046_s0 + $0x3d] sm:$0x1]   ;;  %v977_v7 = vld [vmem:[%s2046_s0 + $0x12] sm:$0x1]   ;;  %v325_v9 = vsel %vm324_vm6, %v970_v4, %v969_v3 }
  0x18   :  { %v978_v8 = vld [vmem:[%s2046_s0 + $0x13] sm:$0x1]   ;;  %vm352_vm8 = vcmask 580608   ;;  %v339_v10 = vsel %vm338_vm7, %v974_v6, %v973_v5  ;;  %s1215_s16 = smov 58   ;;  %v981_v12 = vld [vmem:[%s2046_s0 + $0x3b] sm:$0x1]  }
  0x19   :  { %v353_v11 = vsel %vm352_vm8, %v978_v8, %v977_v7  ;;  %v982_v13 = vld [vmem:[%s2046_s0 + $0x3c] sm:$0x1]   ;;  %vm366_vm9 = vcmask 596992   ;;  %s1216_s21 = smov 57   ;;  %v985_v14 = vld [vmem:[%s2046_s0 + $0x11] sm:$0x1]  }
  0x1a   :  { %130 = vrot.lane.b32.xlu0 %v129_v29, %s1200_s28  ;;  %s1205_s28 = smov 84   ;;  %v986_v15 = vld [vmem:[%s2046_s0 + $0x12] sm:$0x1]   ;;  %vm380_vm10 = vcmask 605184   ;;  %v989_v16 = vld [vmem:[%s2046_s0 + $0x3a] sm:$0x1]   ;;  %v367_v18 = vsel %vm366_vm9, %v982_v13, %v981_v12 }
  0x1b   :  { %144 = vrot.lane.b32.xlu1 %v143_v30, %s1201_s4  ;;  %v990_v17 = vld [vmem:[%s2046_s0 + $0x3b] sm:$0x1]   ;;  %vm394_vm11 = vcmask 621568   ;;  %v381_v19 = vsel %vm380_vm10, %v986_v15, %v985_v14  ;;  %s1218_s2 = smov 54   ;;  %v993_v21 = vld [vmem:[%s2046_s0 + $0x10] sm:$0x1]  }
  0x1c   :  { %v395_v20 = vsel %vm394_vm11, %v990_v17, %v989_v16  ;;  %v994_v22 = vld [vmem:[%s2046_s0 + $0x11] sm:$0x1]   ;;  %vm408_vm12 = vcmask 629760   ;;  %s1219_s7 = smov 52   ;;  %v997_v23 = vld [vmem:[%s2046_s0 + $0x39] sm:$0x1]  }
  0x1d   :  { %158 = vrot.lane.b32.xlu2 %v157_v37, %s1202_s13  ;;  %v998_v24 = vld [vmem:[%s2046_s0 + $0x3a] sm:$0x1]   ;;  %vm422_vm13 = vcmask 646144   ;;  %v1001_v25 = vld [vmem:[%s2046_s0 + $0xf] sm:$0x1]   ;;  %vm436_vm14 = vcmask 654336   ;;  %v409_v27 = vsel %vm408_vm12, %v994_v22, %v993_v21 }
  0x1e   :  { %v1002_v26 = vld [vmem:[%s2046_s0 + $0x10] sm:$0x1]   ;;  %v423_v28 = vsel %vm422_vm13, %v998_v24, %v997_v23  ;;  %s1221_s17 = smov 49   ;;  %v1005_v30 = vld [vmem:[%s2046_s0 + $0x38] sm:$0x1]   ;;  %vm450_vm15 = vcmask 670720  }
  0x1f   :  { %v437_v29 = vsel %vm436_vm14, %v1002_v26, %v1001_v25  ;;  %v1006_v31 = vld [vmem:[%s2046_s0 + $0x39] sm:$0x1]   ;;  %s1222_s22 = smov 48   ;;  %v1009_v32 = vld [vmem:[%s2046_s0 + $0xe] sm:$0x1]   ;;  %vm464_vm0 = vcmask 678912  }
  0x20   :  { %v1010_v33 = vld [vmem:[%s2046_s0 + $0xf] sm:$0x1]   ;;  %v1013_v34 = vld [vmem:[%s2046_s0 + $0x37] sm:$0x1]   ;;  %v1014_v35 = vld [vmem:[%s2046_s0 + $0x38] sm:$0x1]   ;;  %v451_v36 = vsel %vm450_vm15, %v1006_v31, %v1005_v30 }
  0x21   :  { %vm478_vm1 = vcmask 695296   ;;  %v465_v37 = vsel %vm464_vm0, %v1010_v33, %v1009_v32  ;;  %s1224_s3 = smov 45   ;;  %v1018_v40 = vld [vmem:[%s2046_s0 + $0xe] sm:$0x1]   ;;  %vm492_vm2 = vcmask 703488   ;;  %s1225_s8 = smov 43  }
  0x22   :  { %172 = vrot.lane.b32.xlu0 %v171_v38, %s1203_s14  ;;  %s1208_s14 = smov 75   ;;  %v479_v38 = vsel %vm478_vm1, %v1014_v35, %v1013_v34  ;;  %v1021_v41 = vld [vmem:[%s2046_s0 + $0x36] sm:$0x1]   ;;  %v1022_v42 = vld [vmem:[%s2046_s0 + $0x37] sm:$0x1]   ;;  %vm506_vm3 = vcmask 719872  }
  0x23   :  { %186 = vrot.lane.b32.xlu1 %v185_v39, %s1204_s19  ;;  %v1017_v39 = vld [vmem:[%s2046_s0 + $0xd] sm:$0x1]   ;;  %v1025_v43 = vld [vmem:[%s2046_s0 + $0xc] sm:$0x1]   ;;  %vm520_vm4 = vcmask 728064   ;;  %vm62_vm5 = vcmask 932864  }
  0x24   :  { %v1026_v44 = vld [vmem:[%s2046_s0 + $0xd] sm:$0x1]   ;;  %v493_v45 = vsel %vm492_vm2, %v1018_v40, %v1017_v39  ;;  %vm65_vm6 = vcmask 1023888   ;;  %s1227_s18 = smov 40   ;;  %v1029_v49 = vld [vmem:[%s2046_s0 + $0x35] sm:$0x1]  }
  0x25   :  { %200 = vrot.lane.b32.xlu2 %v199_v46, %s1205_s28  ;;  %v507_v46 = vsel %vm506_vm3, %v1022_v42, %v1021_v41  ;;  %v1030_v50 = vld [vmem:[%s2046_s0 + $0x36] sm:$0x1]   ;;  %vm534_vm7 = vcmask 744448   ;;  %s1228_s23 = smov 39   ;;  %vm548_vm8 = vcmask 752640   ;;  %vm562_vm9 = vcmask 769024  }
  0x26   :  { %v1033_v51 = vld [vmem:[%s2046_s0 + $0xb] sm:$0x1]   ;;  %v1034_v52 = vld [vmem:[%s2046_s0 + $0xc] sm:$0x1]   ;;  %v1037_v53 = vld [vmem:[%s2046_s0 + $0x34] sm:$0x1]  }
  0x27   :  { %v1038_v54 = vld [vmem:[%s2046_s0 + $0x35] sm:$0x1]   ;;  %vm76_vm10 = vcmask 908288   ;;  %vm79_vm11 = vcmask 1023864   ;;  %v1041_v59 = vld [vmem:[%s2046_s0 + $0xa] sm:$0x1]  }
  0x28   :  { %v1042_v60 = vld [vmem:[%s2046_s0 + $0xb] sm:$0x1]   ;;  %vm576_vm12 = vcmask 777216   ;;  %s1231_s13 = smov 34   ;;  %vm590_vm13 = vcmask 793600   ;;  %vm604_vm14 = vcmask 801792  }
  0x29   :  { %v1045_v61 = vld [vmem:[%s2046_s0 + $0x33] sm:$0x1]   ;;  %v1046_v62 = vld [vmem:[%s2046_s0 + $0x34] sm:$0x1]   ;;  %v1049_v63 = vld [vmem:[%s2046_s0 + $0x9] sm:$0x1]  }
  0x2a   :  { %214 = vrot.lane.b32.xlu0 %v213_v47, %s1206_s29  ;;  %s1211_s29 = smov 66   ;;  %v521_v47 = vsel %vm520_vm4, %v1026_v44, %v1025_v43  ;;  %s1232_s26 = smov 33   ;;  %vm118_vm15 = vcmask 834560   ;;  %vm3_vm0 = vcmask 1022976   ;;  %vm121_vm1 = vcmask 1023792  }
  0x2b   :  { %228 = vrot.lane.b32.xlu1 %v227_v48, %s1207_s5  ;;  %s1233_s27 = smov 31   ;;  %vm34_vm2 = vcmask 982016   ;;  %v1053_v5 = vld [vmem:[%s2046_s0 + $0x32] sm:$0x1]   ;;  %v1054_v6 = vld [vmem:[%s2046_s0 + $0x33] sm:$0x1]  }
  0x2c   :  { %vm618_vm3 = vcmask 818176   ;;  %vm37_vm4 = vcmask 1023936   ;;  %v1057_v7 = vld [vmem:[%s2046_s0 + $0x8] sm:$0x1]   ;;  %v1062_v12 = vld [vmem:[%s2046_s0 + $0x32] sm:$0x1]  }
  0x2d   :  { %242 = vrot.lane.b32.xlu2 %v241_v55, %s1208_s14  ;;  %v535_v55 = vsel %vm534_vm7, %v1030_v50, %v1029_v49  ;;  %v619_v13 = vsel %vm618_vm3, %v1054_v6, %v1053_v5  ;;  %vm160_vm7 = vcmask 760832   ;;  %v1065_v17 = vld [vmem:[%s2046_s0 + $0x7] sm:$0x1]   ;;  %s1237_s28 = smov 25   ;;  %v1070_v21 = vld [vmem:[%s2046_s0 + $0x31] sm:$0x1]  }
  0x2e   :  { %v1073_v22 = vld [vmem:[%s2046_s0 + $0x6] sm:$0x1]   ;;  %v1074_v24 = vld [vmem:[%s2046_s0 + $0x7] sm:$0x1]   ;;  %vm205_vm3 = vcmask 1023648   ;;  %s1248_s19 = smov 9  }
  0x2f   :  { %v1078_v30 = vld [vmem:[%s2046_s0 + $0x30] sm:$0x1]   ;;  %v1081_v31 = vld [vmem:[%s2046_s0 + $0x5] sm:$0x1]   ;;  %v1082_v33 = vld [vmem:[%s2046_s0 + $0x6] sm:$0x1]  }
  0x30   :  { %v1085_v34 = vld [vmem:[%s2046_s0 + $0x2e] sm:$0x1]   ;;  %v1089_v42 = vld [vmem:[%s2046_s0 + $0x4] sm:$0x1]   ;;  %v1090_v43 = vld [vmem:[%s2046_s0 + $0x5] sm:$0x1]  }
  0x31   :  { %v1093_v44 = vld [vmem:[%s2046_s0 + $0x2d] sm:$0x1]   ;;  %v1098_v49 = vld [vmem:[%s2046_s0 + $0x4] sm:$0x1]   ;;  %s1249_s24 = smov 7   ;;  %s1253_s5 = smov 1  }
  0x32   :  { %256 = vrot.lane.b32.xlu0 %v255_v56, %s1209_s15  ;;  %s1214_s15 = smov 60   ;;  %v549_v56 = vsel %vm548_vm8, %v1034_v52, %v1033_v51  ;;  %vm20_vm8 = vcmask 1006592   ;;  %v1118_v6 = vld [vmem:[%s2046_s0 + $0x2b] sm:$0x1]  }
  0x33   :  { %270 = vrot.lane.b32.xlu1 %v269_v57, %s1210_s20  ;;  %v563_v57 = vsel %vm562_vm9, %v1038_v54, %v1037_v53  ;;  %vm163_vm9 = vcmask 1023720   ;;  %s1238_s20 = smov 24   ;;  %v1101_v54 = vld [vmem:[%s2046_s0 + $0x2c] sm:$0x1]  }
  0x35   :  { %284 = vrot.lane.b32.xlu2 %v283_v0, %s1211_s29  ;;  %v1050_v0 = vld [vmem:[%s2046_s0 + $0xa] sm:$0x1]  }
  0x36   :  { %v605_v3 = vsel %vm604_vm14, %v1050_v0, %v1049_v63  ;;  %vm51_vm14 = vcmask 1023912  }
  0x3a   :  { %298 = vrot.lane.b32.xlu0 %v297_v1, %s1212_s30  ;;  %s1217_s30 = smov 55   ;;  %v577_v1 = vsel %vm576_vm12, %v1042_v60, %v1041_v59  ;;  %vm48_vm12 = vcmask 957440   ;;  %v1109_v59 = vld [vmem:[%s2046_s0 + $0x2b] sm:$0x1]  }
  0x3b   :  { %312 = vrot.lane.b32.xlu1 %v311_v2, %s1213_s6  ;;  %v591_v2 = vsel %vm590_vm13, %v1046_v62, %v1045_v61  ;;  %vm674_vm13 = vcmask 867328   ;;  %v1110_v61 = vld [vmem:[%s2046_s0 + $0x2c] sm:$0x1]  }
  0x3d   :  { %326 = vrot.lane.b32.xlu2 %v325_v9, %s1214_s15  ;;  %v1058_v9 = vld [vmem:[%s2046_s0 + $0x9] sm:$0x1]  }
  0x42   :  { %340 = vrot.lane.b32.xlu0 %v339_v10, %s1215_s16  ;;  %s1220_s16 = smov 51   ;;  %v1061_v10 = vld [vmem:[%s2046_s0 + $0x31] sm:$0x1]  }
  0x43   :  { %354 = vrot.lane.b32.xlu1 %v353_v11, %s1216_s21  ;;  %s1239_s21 = smov 22  }
  0x45   :  { %368 = vrot.lane.b32.xlu2 %v367_v18, %s1217_s30  ;;  %v1066_v18 = vld [vmem:[%s2046_s0 + $0x8] sm:$0x1]  }
  0x4a   :  { %382 = vrot.lane.b32.xlu0 %v381_v19, %s1218_s2  ;;  %s1223_s2 = smov 46   ;;  %v1069_v19 = vld [vmem:[%s2046_s0 + $0x30] sm:$0x1]  }
  0x4b   :  { %396 = vrot.lane.b32.xlu1 %v395_v20, %s1219_s7  ;;  %s1229_s7 = smov 37   ;;  %v675_v26 = vsel %vm674_vm13, %v1070_v21, %v1069_v19  ;;  %vm135_vm13 = vcmask 1023768  }
  0x4d   :  { %410 = vrot.lane.b32.xlu2 %v409_v27, %s1220_s16  ;;  %s1250_s16 = smov 6  }
  0x52   :  { %424 = vrot.lane.b32.xlu0 %v423_v28, %s1221_s17  ;;  %s1226_s17 = smov 42  }
  0x53   :  { %438 = vrot.lane.b32.xlu1 %v437_v29, %s1222_s22  ;;  %s1235_s22 = smov 28   ;;  %v1077_v29 = vld [vmem:[%s2046_s0 + $0x2f] sm:$0x1]  }
  0x55   :  { %452 = vrot.lane.b32.xlu2 %v451_v36, %s1223_s2  ;;  %v1086_v36 = vld [vmem:[%s2046_s0 + $0x2f] sm:$0x1]  }
  0x5a   :  { %466 = vrot.lane.b32.xlu0 %v465_v37, %s1224_s3  ;;  %s1234_s3 = smov 30  }
  0x5b   :  { %480 = vrot.lane.b32.xlu1 %v479_v38, %s1225_s8  ;;  %s1230_s8 = smov 36   ;;  %v2_v38 = vld [vmem:[%s2046_s0] sm:$0x1]  }
  0x5c   :  { %4 = vst.msk [vmem:[%s2047_s1] sm:$0x1] %vm3_vm0, %v2_v38  }
  0x5d   :  { %494 = vrot.lane.b32.xlu2 %v493_v45, %s1226_s17  ;;  %s1251_s17 = smov 4  }
  0x5f   :  { %v61_v48 = vpop.permute.xlu2 %60  }
  0x60   :  { %895 = vst.msk [vmem:[%s2047_s1 + $0x26] sm:$0x1] %vm62_vm5, %v61_v48   ;;  %vm632_vm5 = vcmask 826368  }
  0x61   :  { %896 = vst.msk [vmem:[%s2047_s1 + $0x26] sm:$0x1] %vm65_vm6, %v61_v48   ;;  %vm646_vm6 = vcmask 842752   ;;  %v633_v14 = vsel %vm632_vm5, %v1058_v9, %v1057_v7  ;;  %vm702_vm5 = vcmask 891904   ;;  %v1121_v9 = vld [vmem:[%s2046_s0 + $0x1] sm:$0x1]  }
  0x62   :  { %508 = vrot.lane.b32.xlu0 %v507_v46, %s1227_s18  ;;  %v647_v15 = vsel %vm646_vm6, %v1062_v12, %v1061_v10  ;;  %vm104_vm6 = vcmask 859136   ;;  %v703_v37 = vsel %vm702_vm5, %v1078_v30, %v1077_v29  ;;  %v1094_v46 = vld [vmem:[%s2046_s0 + $0x2e] sm:$0x1]   ;;  %vm174_vm5 = vcmask 736256   ;;  %s1247_s18 = smov 10  }
  0x63   :  { %522 = vrot.lane.b32.xlu1 %v521_v47, %s1228_s23  ;;  %s1236_s23 = smov 27   ;;  %v1097_v47 = vld [vmem:[%s2046_s0 + $0x3] sm:$0x1]  }
  0x65   :  { %536 = vrot.lane.b32.xlu2 %v535_v55, %s1229_s7  ;;  %v1102_v55 = vld [vmem:[%s2046_s0 + $0x2d] sm:$0x1]  }
  0x67   :  { %v75_v58 = vpop.permute.xlu2 %74  }
  0x68   :  { %899 = vst.msk [vmem:[%s2047_s1 + $0x25] sm:$0x1] %vm76_vm10, %v75_v58   ;;  %vm23_vm10 = vcmask 1023960  }
  0x69   :  { %900 = vst.msk [vmem:[%s2047_s1 + $0x25] sm:$0x1] %vm79_vm11, %v75_v58   ;;  %vm660_vm11 = vcmask 850944   ;;  %v1106_v58 = vld [vmem:[%s2046_s0 + $0x3] sm:$0x1]  }
  0x6a   :  { %550 = vrot.lane.b32.xlu0 %v549_v56, %s1230_s8  ;;  %v661_v25 = vsel %vm660_vm11, %v1066_v18, %v1065_v17  ;;  %vm132_vm11 = vcmask 809984   ;;  %v1105_v56 = vld [vmem:[%s2046_s0 + $0x2] sm:$0x1]  }
  0x6b   :  { %564 = vrot.lane.b32.xlu1 %v563_v57, %s1231_s13 }
  0x6d   :  { %578 = vrot.lane.b32.xlu2 %v577_v1, %s1232_s26  ;;  %s1240_s26 = smov 21  }
  0x6f   :  { %v117_v4 = vpop.permute.xlu2 %116  }
  0x70   :  { %911 = vst.msk [vmem:[%s2047_s1 + $0x22] sm:$0x1] %vm118_vm15, %v117_v4   ;;  %vm688_vm15 = vcmask 875520  }
  0x71   :  { %912 = vst.msk [vmem:[%s2047_s1 + $0x22] sm:$0x1] %vm121_vm1, %v117_v4   ;;  %v689_v27 = vsel %vm688_vm15, %v1074_v24, %v1073_v22  ;;  %vm202_vm1 = vcmask 687104   ;;  %vm146_vm15 = vcmask 785408   ;;  %v1117_v4 = vld [vmem:[%s2046_s0 + $0x2a] sm:$0x1]  }
  0x72   :  { %592 = vrot.lane.b32.xlu0 %v591_v2, %s1233_s27  ;;  %v1113_v2 = vld [vmem:[%s2046_s0 + $0x1] sm:$0x1]  }
  0x73   :  { %606 = vrot.lane.b32.xlu1 %v605_v3, %s1234_s3  ;;  %v1114_v3 = vld [vmem:[%s2046_s0 + $0x2] sm:$0x1]  }
  0x74   :  { %v8_v8 = vpop.permute.xlu0 %7  }
  0x75   :  { %880 = vst.msk [vmem:[%s2047_s1 + $0x2a] sm:$0x1] %vm3_vm0, %v8_v8   ;;  %v33_v11 = vpop.permute.xlu1 %32   ;;  %620 = vrot.lane.b32.xlu2 %v619_v13, %s1235_s22  ;;  %v852_v8 = vld [vmem:[%s2046_s0] sm:$0x1]  }
  0x76   :  { %887 = vst.msk [vmem:[%s2047_s1 + $0x28] sm:$0x1] %vm34_vm2, %v33_v11   ;;  %vm90_vm2 = vcmask 883712   ;;  %v856_v12 = vsel %vm3_vm0, %v1121_v9, %v852_v8  ;;  %vm370_vm0 = vcmask 449536  }
  0x77   :  { %888 = vst.msk [vmem:[%s2047_s1 + $0x28] sm:$0x1] %vm37_vm4, %v33_v11   ;;  %v159_v16 = vpop.permute.xlu2 %158   ;;  %vm93_vm4 = vcmask 1023840  }
  0x78   :  { %923 = vst.msk [vmem:[%s2047_s1 + $0x1f] sm:$0x1] %vm160_vm7, %v159_v16   ;;  %vm716_vm7 = vcmask 900096  }
  0x79   :  { %924 = vst.msk [vmem:[%s2047_s1 + $0x1f] sm:$0x1] %vm163_vm9, %v159_v16   ;;  %vm730_vm9 = vcmask 916480   ;;  %v717_v39 = vsel %vm716_vm7, %v1082_v33, %v1081_v31  ;;  %vm177_vm7 = vcmask 1023696  }
  0x7a   :  { %634 = vrot.lane.b32.xlu0 %v633_v14, %s1236_s23  ;;  %v731_v40 = vsel %vm730_vm9, %v1086_v36, %v1085_v34  ;;  %s1242_s23 = smov 18   ;;  %vm188_vm9 = vcmask 711680   ;;  %v1124_v14 = vld [vmem:[%s2046_s0 + $0x29] sm:$0x1]  }
  0x7b   :  { %648 = vrot.lane.b32.xlu1 %v647_v15, %s1237_s28  ;;  %s1243_s28 = smov 16   ;;  %v1125_v15 = vld [vmem:[%s2046_s0 + $0x2a] sm:$0x1]   ;;  %s1252_s0 = smov 3  }
  0x7c   :  { %v19_v20 = vpop.permute.xlu0 %18  }
  0x7d   :  { %883 = vst.msk [vmem:[%s2047_s1 + $0x29] sm:$0x1] %vm20_vm8, %v19_v20   ;;  %v47_v23 = vpop.permute.xlu1 %46   ;;  %662 = vrot.lane.b32.xlu2 %v661_v25, %s1238_s20  ;;  %vm107_vm8 = vcmask 1023816   ;;  %s1241_s20 = smov 19  }
  0x7e   :  { %884 = vst.msk [vmem:[%s2047_s1 + $0x29] sm:$0x1] %vm23_vm10, %v19_v20   ;;  %vm244_vm10 = vcmask 613376  }
  0x7f   :  { %891 = vst.msk [vmem:[%s2047_s1 + $0x27] sm:$0x1] %vm48_vm12, %v47_v23   ;;  %v201_v28 = vpop.permute.xlu2 %200   ;;  %vm247_vm12 = vcmask 1023576  }
  0x80   :  { %892 = vst.msk [vmem:[%s2047_s1 + $0x27] sm:$0x1] %vm51_vm14, %v47_v23   ;;  %vm744_vm14 = vcmask 924672  }
  0x81   :  { %935 = vst.msk [vmem:[%s2047_s1 + $0x1c] sm:$0x1] %vm202_vm1, %v201_v28   ;;  %vm758_vm1 = vcmask 941056   ;;  %v745_v50 = vsel %vm744_vm14, %v1090_v43, %v1089_v42  ;;  %vm331_vm14 = vcmask 1023456  }
  0x82   :  { %676 = vrot.lane.b32.xlu0 %v675_v26, %s1239_s21  ;;  %936 = vst.msk [vmem:[%s2047_s1 + $0x1c] sm:$0x1] %vm205_vm3, %v201_v28   ;;  %vm772_vm3 = vcmask 949248   ;;  %v759_v51 = vsel %vm758_vm1, %v1094_v46, %v1093_v44  ;;  %s1245_s21 = smov 13   ;;  %vm828_vm1 = vcmask 998400  }
  0x83   :  { %690 = vrot.lane.b32.xlu1 %v689_v27, %s1240_s26  ;;  %v773_v52 = vsel %vm772_vm3, %v1098_v49, %v1097_v47  ;;  %s1246_s26 = smov 12   ;;  %vm230_vm3 = vcmask 637952   ;;  %v829_v10 = vsel %vm828_vm1, %v1114_v3, %v1113_v2  ;;  %vm314_vm1 = vcmask 498688  }
  0x84   :  { %v89_v32 = vpop.permute.xlu0 %88  }
  0x85   :  { %903 = vst.msk [vmem:[%s2047_s1 + $0x24] sm:$0x1] %vm90_vm2, %v89_v32   ;;  %v103_v35 = vpop.permute.xlu1 %102   ;;  %704 = vrot.lane.b32.xlu2 %v703_v37, %s1241_s20  ;;  %vm149_vm2 = vcmask 1023744   ;;  %s1244_s20 = smov 15  }
  0x86   :  { %904 = vst.msk [vmem:[%s2047_s1 + $0x24] sm:$0x1] %vm93_vm4, %v89_v32   ;;  %vm286_vm4 = vcmask 539648  }
  0x87   :  { %907 = vst.msk [vmem:[%s2047_s1 + $0x23] sm:$0x1] %vm104_vm6, %v103_v35   ;;  %v243_v41 = vpop.permute.xlu2 %242   ;;  %vm289_vm6 = vcmask 1023504  }
  0x88   :  { %908 = vst.msk [vmem:[%s2047_s1 + $0x23] sm:$0x1] %vm107_vm8, %v103_v35   ;;  %vm786_vm8 = vcmask 965632  }
  0x89   :  { %947 = vst.msk [vmem:[%s2047_s1 + $0x19] sm:$0x1] %vm244_vm10, %v243_v41   ;;  %vm800_vm10 = vcmask 973824   ;;  %v787_v62 = vsel %vm786_vm8, %v1102_v55, %v1101_v54  ;;  %vm869_vm8 = vcmask 1039360  }
  0x8a   :  { %718 = vrot.lane.b32.xlu0 %v717_v39, %s1242_s23  ;;  %948 = vst.msk [vmem:[%s2047_s1 + $0x19] sm:$0x1] %vm247_vm12, %v243_v41   ;;  %vm814_vm12 = vcmask 990208   ;;  %v801_v63 = vsel %vm800_vm10, %v1106_v58, %v1105_v56  ;;  %vm272_vm10 = vcmask 564224   ;;  %v870_v18 = vsel %vm869_vm8, %v1125_v15, %v1124_v14 }
  0x8b   :  { %732 = vrot.lane.b32.xlu1 %v731_v40, %s1243_s28  ;;  %v815_v0 = vsel %vm814_vm12, %v1110_v61, %v1109_v59  ;;  %vm412_vm12 = vcmask 416768   ;;  %vm496_vm8 = vcmask 343040  }
  0x8c   :  { %v131_v45 = vpop.permute.xlu0 %130  }
  0x8d   :  { %915 = vst.msk [vmem:[%s2047_s1 + $0x21] sm:$0x1] %vm132_vm11, %v131_v45   ;;  %v145_v48 = vpop.permute.xlu1 %144   ;;  %746 = vrot.lane.b32.xlu2 %v745_v50, %s1244_s20  ;;  %vm191_vm11 = vcmask 1023672  }
  0x8e   :  { %916 = vst.msk [vmem:[%s2047_s1 + $0x21] sm:$0x1] %vm135_vm13, %v131_v45   ;;  %vm328_vm13 = vcmask 490496  }
  0x8f   :  { %919 = vst.msk [vmem:[%s2047_s1 + $0x20] sm:$0x1] %vm146_vm15, %v145_v48   ;;  %v285_v53 = vpop.permute.xlu2 %284   ;;  %vm216_vm15 = vcmask 662528  }
  0x90   :  { %920 = vst.msk [vmem:[%s2047_s1 + $0x20] sm:$0x1] %vm149_vm2, %v145_v48   ;;  %vm219_vm2 = vcmask 1023624  }
  0x91   :  { %959 = vst.msk [vmem:[%s2047_s1 + $0x16] sm:$0x1] %vm286_vm4, %v285_v53   ;;  %vm233_vm4 = vcmask 1023600  }
  0x92   :  { %760 = vrot.lane.b32.xlu0 %v759_v51, %s1245_s21  ;;  %960 = vst.msk [vmem:[%s2047_s1 + $0x16] sm:$0x1] %vm289_vm6, %v285_v53   ;;  %vm373_vm6 = vcmask 1023416  }
  0x93   :  { %774 = vrot.lane.b32.xlu1 %v773_v52, %s1246_s26 }
  0x94   :  { %v173_v57 = vpop.permute.xlu0 %172  }
  0x95   :  { %927 = vst.msk [vmem:[%s2047_s1 + $0x1e] sm:$0x1] %vm174_vm5, %v173_v57   ;;  %v187_v60 = vpop.permute.xlu1 %186   ;;  %788 = vrot.lane.b32.xlu2 %v787_v62, %s1247_s18  ;;  %vm842_vm5 = vcmask 1014784  }
  0x96   :  { %928 = vst.msk [vmem:[%s2047_s1 + $0x1e] sm:$0x1] %vm177_vm7, %v173_v57   ;;  %v843_v11 = vsel %vm842_vm5, %v1118_v6, %v1117_v4  ;;  %vm258_vm7 = vcmask 588800   ;;  %vm342_vm5 = vcmask 474112  }
  0x97   :  { %931 = vst.msk [vmem:[%s2047_s1 + $0x1d] sm:$0x1] %vm188_vm9, %v187_v60   ;;  %v327_v1 = vpop.permute.xlu2 %326   ;;  %vm261_vm9 = vcmask 1023552  }
  0x98   :  { %932 = vst.msk [vmem:[%s2047_s1 + $0x1d] sm:$0x1] %vm191_vm11, %v187_v60   ;;  %vm275_vm11 = vcmask 1023528  }
  0x99   :  { %971 = vst.msk [vmem:[%s2047_s1 + $0x14] sm:$0x1] %vm328_vm13, %v327_v1   ;;  %vm415_vm13 = vcmask 1023384  }
  0x9a   :  { %802 = vrot.lane.b32.xlu0 %v801_v63, %s1248_s19  ;;  %972 = vst.msk [vmem:[%s2047_s1 + $0x14] sm:$0x1] %vm331_vm14, %v327_v1   ;;  %vm300_vm14 = vcmask 515072  }
  0x9b   :  { %816 = vrot.lane.b32.xlu1 %v815_v0, %s1249_s24 }
  0x9c   :  { %v215_v5 = vpop.permute.xlu0 %214  }
  0x9d   :  { %939 = vst.msk [vmem:[%s2047_s1 + $0x1b] sm:$0x1] %vm216_vm15, %v215_v5   ;;  %v229_v7 = vpop.permute.xlu1 %228   ;;  %830 = vrot.lane.b32.xlu2 %v829_v10, %s1250_s16  ;;  %vm303_vm15 = vcmask 1023480  }
  0x9e   :  { %940 = vst.msk [vmem:[%s2047_s1 + $0x1b] sm:$0x1] %vm219_vm2, %v215_v5   ;;  %vm317_vm2 = vcmask 1023464  }
  0x9f   :  { %943 = vst.msk [vmem:[%s2047_s1 + $0x1a] sm:$0x1] %vm230_vm3, %v229_v7   ;;  %v369_v13 = vpop.permute.xlu2 %368   ;;  %vm454_vm3 = vcmask 375808  }
  0xa0   :  { %944 = vst.msk [vmem:[%s2047_s1 + $0x1a] sm:$0x1] %vm233_vm4, %v229_v7   ;;  %vm457_vm4 = vcmask 1023344  }
  0xa1   :  { %983 = vst.msk [vmem:[%s2047_s1 + $0x3d] sm:$0x1] %vm370_vm0, %v369_v13   ;;  %vm345_vm0 = vcmask 1023440  }
  0xa2   :  { %844 = vrot.lane.b32.xlu0 %v843_v11, %s1251_s17  ;;  %984 = vst.msk [vmem:[%s2047_s1 + $0x3d] sm:$0x1] %vm373_vm6, %v369_v13   ;;  %vm356_vm6 = vcmask 465920  }
  0xa3   :  { %857 = vrot.lane.b32.xlu1 %v856_v12, %s1252_s0 }
  0xa4   :  { %v257_v16 = vpop.permute.xlu0 %256  }
  0xa5   :  { %951 = vst.msk [vmem:[%s2047_s1 + $0x18] sm:$0x1] %vm258_vm7, %v257_v16   ;;  %v271_v17 = vpop.permute.xlu1 %270   ;;  %871 = vrot.lane.b32.xlu2 %v870_v18, %s1253_s5  ;;  %vm359_vm7 = vcmask 1023432  }
  0xa6   :  { %952 = vst.msk [vmem:[%s2047_s1 + $0x18] sm:$0x1] %vm261_vm9, %v257_v16   ;;  %vm499_vm9 = vcmask 1023312  }
  0xa7   :  { %955 = vst.msk [vmem:[%s2047_s1 + $0x17] sm:$0x1] %vm272_vm10, %v271_v17   ;;  %v411_v19 = vpop.permute.xlu2 %410   ;;  %vm384_vm10 = vcmask 441344  }
  0xa8   :  { %956 = vst.msk [vmem:[%s2047_s1 + $0x17] sm:$0x1] %vm275_vm11, %v271_v17   ;;  %vm387_vm11 = vcmask 1023408  }
  0xa9   :  { %995 = vst.msk [vmem:[%s2047_s1 + $0x11] sm:$0x1] %vm412_vm12, %v411_v19   ;;  %vm398_vm12 = vcmask 424960  }
  0xaa   :  { %996 = vst.msk [vmem:[%s2047_s1 + $0x11] sm:$0x1] %vm415_vm13, %v411_v19   ;;  %vm401_vm13 = vcmask 1023392  }
  0xac   :  { %v299_v20 = vpop.permute.xlu0 %298  }
  0xad   :  { %963 = vst.msk [vmem:[%s2047_s1 + $0x15] sm:$0x1] %vm300_vm14, %v299_v20   ;;  %v313_v21 = vpop.permute.xlu1 %312   ;;  %vm538_vm14 = vcmask 302080  }
  0xae   :  { %964 = vst.msk [vmem:[%s2047_s1 + $0x15] sm:$0x1] %vm303_vm15, %v299_v20   ;;  %vm541_vm15 = vcmask 1023272  }
  0xaf   :  { %967 = vst.msk [vmem:[%s2047_s1 + $0x3f] sm:$0x1] %vm314_vm1, %v313_v21   ;;  %v453_v22 = vpop.permute.xlu2 %452   ;;  %vm426_vm1 = vcmask 400384  }
  0xb0   :  { %968 = vst.msk [vmem:[%s2047_s1 + $0x3f] sm:$0x1] %vm317_vm2, %v313_v21   ;;  %vm429_vm2 = vcmask 1023368  }
  0xb1   :  { %1007 = vst.msk [vmem:[%s2047_s1 + $0x3a] sm:$0x1] %vm454_vm3, %v453_v22   ;;  %vm440_vm3 = vcmask 392192  }
  0xb2   :  { %1008 = vst.msk [vmem:[%s2047_s1 + $0x3a] sm:$0x1] %vm457_vm4, %v453_v22   ;;  %vm443_vm4 = vcmask 1023360  }
  0xb4   :  { %v341_v23 = vpop.permute.xlu0 %340  }
  0xb5   :  { %975 = vst.msk [vmem:[%s2047_s1 + $0x3e] sm:$0x1] %vm342_vm5, %v341_v23   ;;  %v355_v24 = vpop.permute.xlu1 %354   ;;  %vm580_vm5 = vcmask 269312  }
  0xb6   :  { %976 = vst.msk [vmem:[%s2047_s1 + $0x3e] sm:$0x1] %vm345_vm0, %v341_v23   ;;  %vm583_vm0 = vcmask 1023240  }
  0xb7   :  { %979 = vst.msk [vmem:[%s2047_s1 + $0x13] sm:$0x1] %vm356_vm6, %v355_v24   ;;  %v495_v25 = vpop.permute.xlu2 %494   ;;  %vm468_vm6 = vcmask 367616  }
  0xb8   :  { %980 = vst.msk [vmem:[%s2047_s1 + $0x13] sm:$0x1] %vm359_vm7, %v355_v24   ;;  %vm471_vm7 = vcmask 1023336  }
  0xb9   :  { %1019 = vst.msk [vmem:[%s2047_s1 + $0xe] sm:$0x1] %vm496_vm8, %v495_v25   ;;  %vm482_vm8 = vcmask 351232  }
  0xba   :  { %1020 = vst.msk [vmem:[%s2047_s1 + $0xe] sm:$0x1] %vm499_vm9, %v495_v25   ;;  %vm485_vm9 = vcmask 1023320  }
  0xbc   :  { %v383_v26 = vpop.permute.xlu0 %382  }
  0xbd   :  { %987 = vst.msk [vmem:[%s2047_s1 + $0x12] sm:$0x1] %vm384_vm10, %v383_v26   ;;  %v397_v27 = vpop.permute.xlu1 %396   ;;  %vm622_vm10 = vcmask 228352  }
  0xbe   :  { %988 = vst.msk [vmem:[%s2047_s1 + $0x12] sm:$0x1] %vm387_vm11, %v383_v26   ;;  %vm625_vm11 = vcmask 1023200  }
  0xbf   :  { %991 = vst.msk [vmem:[%s2047_s1 + $0x3c] sm:$0x1] %vm398_vm12, %v397_v27   ;;  %v537_v28 = vpop.permute.xlu2 %536   ;;  %vm510_vm12 = vcmask 326656  }
  0xc0   :  { %992 = vst.msk [vmem:[%s2047_s1 + $0x3c] sm:$0x1] %vm401_vm13, %v397_v27   ;;  %vm513_vm13 = vcmask 1023296  }
  0xc1   :  { %1031 = vst.msk [vmem:[%s2047_s1 + $0x37] sm:$0x1] %vm538_vm14, %v537_v28   ;;  %vm524_vm14 = vcmask 318464  }
  0xc2   :  { %1032 = vst.msk [vmem:[%s2047_s1 + $0x37] sm:$0x1] %vm541_vm15, %v537_v28   ;;  %vm527_vm15 = vcmask 1023288  }
  0xc4   :  { %v425_v29 = vpop.permute.xlu0 %424  }
  0xc5   :  { %999 = vst.msk [vmem:[%s2047_s1 + $0x3b] sm:$0x1] %vm426_vm1, %v425_v29   ;;  %v439_v30 = vpop.permute.xlu1 %438   ;;  %vm664_vm1 = vcmask 195584  }
  0xc6   :  { %1000 = vst.msk [vmem:[%s2047_s1 + $0x3b] sm:$0x1] %vm429_vm2, %v425_v29   ;;  %vm667_vm2 = vcmask 1023168  }
  0xc7   :  { %1003 = vst.msk [vmem:[%s2047_s1 + $0x10] sm:$0x1] %vm440_vm3, %v439_v30   ;;  %v579_v31 = vpop.permute.xlu2 %578   ;;  %vm552_vm3 = vcmask 293888  }
  0xc8   :  { %1004 = vst.msk [vmem:[%s2047_s1 + $0x10] sm:$0x1] %vm443_vm4, %v439_v30   ;;  %vm555_vm4 = vcmask 1023264  }
  0xc9   :  { %1043 = vst.msk [vmem:[%s2047_s1 + $0xb] sm:$0x1] %vm580_vm5, %v579_v31   ;;  %vm566_vm5 = vcmask 277504  }
  0xca   :  { %1044 = vst.msk [vmem:[%s2047_s1 + $0xb] sm:$0x1] %vm583_vm0, %v579_v31   ;;  %vm569_vm0 = vcmask 1023248  }
  0xcc   :  { %v467_v32 = vpop.permute.xlu0 %466  }
  0xcd   :  { %1011 = vst.msk [vmem:[%s2047_s1 + $0xf] sm:$0x1] %vm468_vm6, %v467_v32   ;;  %v481_v33 = vpop.permute.xlu1 %480   ;;  %vm706_vm6 = vcmask 154624  }
  0xce   :  { %1012 = vst.msk [vmem:[%s2047_s1 + $0xf] sm:$0x1] %vm471_vm7, %v467_v32   ;;  %vm709_vm7 = vcmask 1023128  }
  0xcf   :  { %1015 = vst.msk [vmem:[%s2047_s1 + $0x39] sm:$0x1] %vm482_vm8, %v481_v33   ;;  %v621_v34 = vpop.permute.xlu2 %620   ;;  %vm594_vm8 = vcmask 252928  }
  0xd0   :  { %1016 = vst.msk [vmem:[%s2047_s1 + $0x39] sm:$0x1] %vm485_vm9, %v481_v33   ;;  %vm597_vm9 = vcmask 1023224  }
  0xd1   :  { %1055 = vst.msk [vmem:[%s2047_s1 + $0x34] sm:$0x1] %vm622_vm10, %v621_v34   ;;  %vm608_vm10 = vcmask 244736  }
  0xd2   :  { %1056 = vst.msk [vmem:[%s2047_s1 + $0x34] sm:$0x1] %vm625_vm11, %v621_v34   ;;  %vm611_vm11 = vcmask 1023216  }
  0xd4   :  { %v509_v35 = vpop.permute.xlu0 %508  }
  0xd5   :  { %1023 = vst.msk [vmem:[%s2047_s1 + $0x38] sm:$0x1] %vm510_vm12, %v509_v35   ;;  %v523_v36 = vpop.permute.xlu1 %522   ;;  %vm748_vm12 = vcmask 121856  }
  0xd6   :  { %1024 = vst.msk [vmem:[%s2047_s1 + $0x38] sm:$0x1] %vm513_vm13, %v509_v35   ;;  %vm751_vm13 = vcmask 1023096  }
  0xd7   :  { %1027 = vst.msk [vmem:[%s2047_s1 + $0xd] sm:$0x1] %vm524_vm14, %v523_v36   ;;  %v663_v37 = vpop.permute.xlu2 %662   ;;  %vm636_vm14 = vcmask 220160  }
  0xd8   :  { %1028 = vst.msk [vmem:[%s2047_s1 + $0xd] sm:$0x1] %vm527_vm15, %v523_v36   ;;  %vm639_vm15 = vcmask 1023192  }
  0xd9   :  { %1067 = vst.msk [vmem:[%s2047_s1 + $0x8] sm:$0x1] %vm664_vm1, %v663_v37   ;;  %vm650_vm1 = vcmask 203776  }
  0xda   :  { %1068 = vst.msk [vmem:[%s2047_s1 + $0x8] sm:$0x1] %vm667_vm2, %v663_v37   ;;  %vm653_vm2 = vcmask 1023176  }
  0xdc   :  { %v551_v38 = vpop.permute.xlu0 %550  }
  0xdd   :  { %1035 = vst.msk [vmem:[%s2047_s1 + $0xc] sm:$0x1] %vm552_vm3, %v551_v38   ;;  %v565_v39 = vpop.permute.xlu1 %564   ;;  %vm790_vm3 = vcmask 80896  }
  0xde   :  { %1036 = vst.msk [vmem:[%s2047_s1 + $0xc] sm:$0x1] %vm555_vm4, %v551_v38   ;;  %vm793_vm4 = vcmask 1023056  }
  0xdf   :  { %1039 = vst.msk [vmem:[%s2047_s1 + $0x36] sm:$0x1] %vm566_vm5, %v565_v39   ;;  %v705_v40 = vpop.permute.xlu2 %704   ;;  %vm678_vm5 = vcmask 179200  }
  0xe0   :  { %1040 = vst.msk [vmem:[%s2047_s1 + $0x36] sm:$0x1] %vm569_vm0, %v565_v39   ;;  %vm681_vm0 = vcmask 1023152  }
  0xe1   :  { %1079 = vst.msk [vmem:[%s2047_s1 + $0x31] sm:$0x1] %vm706_vm6, %v705_v40   ;;  %vm692_vm6 = vcmask 171008  }
  0xe2   :  { %1080 = vst.msk [vmem:[%s2047_s1 + $0x31] sm:$0x1] %vm709_vm7, %v705_v40   ;;  %vm695_vm7 = vcmask 1023144  }
  0xe4   :  { %v593_v41 = vpop.permute.xlu0 %592  }
  0xe5   :  { %1047 = vst.msk [vmem:[%s2047_s1 + $0x35] sm:$0x1] %vm594_vm8, %v593_v41   ;;  %v607_v42 = vpop.permute.xlu1 %606   ;;  %vm832_vm8 = vcmask 48128  }
  0xe6   :  { %1048 = vst.msk [vmem:[%s2047_s1 + $0x35] sm:$0x1] %vm597_vm9, %v593_v41   ;;  %vm835_vm9 = vcmask 1023024  }
  0xe7   :  { %1051 = vst.msk [vmem:[%s2047_s1 + $0xa] sm:$0x1] %vm608_vm10, %v607_v42   ;;  %v747_v43 = vpop.permute.xlu2 %746   ;;  %vm720_vm10 = vcmask 146432  }
  0xe8   :  { %1052 = vst.msk [vmem:[%s2047_s1 + $0xa] sm:$0x1] %vm611_vm11, %v607_v42   ;;  %vm723_vm11 = vcmask 1023120  }
  0xe9   :  { %1091 = vst.msk [vmem:[%s2047_s1 + $0x5] sm:$0x1] %vm748_vm12, %v747_v43   ;;  %vm734_vm12 = vcmask 130048  }
  0xea   :  { %1092 = vst.msk [vmem:[%s2047_s1 + $0x5] sm:$0x1] %vm751_vm13, %v747_v43   ;;  %vm737_vm13 = vcmask 1023104  }
  0xec   :  { %v635_v44 = vpop.permute.xlu0 %634  }
  0xed   :  { %1059 = vst.msk [vmem:[%s2047_s1 + $0x9] sm:$0x1] %vm636_vm14, %v635_v44   ;;  %v649_v45 = vpop.permute.xlu1 %648   ;;  %vm873_vm14 = vcmask 7168  }
  0xee   :  { %1060 = vst.msk [vmem:[%s2047_s1 + $0x9] sm:$0x1] %vm639_vm15, %v635_v44   ;;  %vm876_vm15 = vcmask 1022984  }
  0xef   :  { %1063 = vst.msk [vmem:[%s2047_s1 + $0x33] sm:$0x1] %vm650_vm1, %v649_v45   ;;  %v789_v46 = vpop.permute.xlu2 %788   ;;  %vm762_vm1 = vcmask 105472  }
  0xf0   :  { %1064 = vst.msk [vmem:[%s2047_s1 + $0x33] sm:$0x1] %vm653_vm2, %v649_v45   ;;  %vm765_vm2 = vcmask 1023080  }
  0xf1   :  { %1103 = vst.msk [vmem:[%s2047_s1 + $0x2e] sm:$0x1] %vm790_vm3, %v789_v46   ;;  %vm776_vm3 = vcmask 97280  }
  0xf2   :  { %1104 = vst.msk [vmem:[%s2047_s1 + $0x2e] sm:$0x1] %vm793_vm4, %v789_v46   ;;  %vm779_vm4 = vcmask 1023072  }
  0xf4   :  { %v677_v47 = vpop.permute.xlu0 %676  }
  0xf5   :  { %1071 = vst.msk [vmem:[%s2047_s1 + $0x32] sm:$0x1] %vm678_vm5, %v677_v47   ;;  %v691_v48 = vpop.permute.xlu1 %690   ;;  %vm804_vm5 = vcmask 72704  }
  0xf6   :  { %1072 = vst.msk [vmem:[%s2047_s1 + $0x32] sm:$0x1] %vm681_vm0, %v677_v47   ;;  %vm807_vm0 = vcmask 1023048  }
  0xf7   :  { %1075 = vst.msk [vmem:[%s2047_s1 + $0x7] sm:$0x1] %vm692_vm6, %v691_v48   ;;  %v831_v49 = vpop.permute.xlu2 %830   ;;  %vm818_vm6 = vcmask 56320  }
  0xf8   :  { %1076 = vst.msk [vmem:[%s2047_s1 + $0x7] sm:$0x1] %vm695_vm7, %v691_v48   ;;  %vm821_vm7 = vcmask 1023032  }
  0xf9   :  { %1115 = vst.msk [vmem:[%s2047_s1 + $0x2] sm:$0x1] %vm832_vm8, %v831_v49   ;;  %vm846_vm8 = vcmask 31744  }
  0xfa   :  { %1116 = vst.msk [vmem:[%s2047_s1 + $0x2] sm:$0x1] %vm835_vm9, %v831_v49   ;;  %vm849_vm9 = vcmask 1023008  }
  0xfc   :  { %v719_v50 = vpop.permute.xlu0 %718  }
  0xfd   :  { %1083 = vst.msk [vmem:[%s2047_s1 + $0x6] sm:$0x1] %vm720_vm10, %v719_v50   ;;  %v733_v51 = vpop.permute.xlu1 %732   ;;  %vm859_vm10 = vcmask 23552  }
  0xfe   :  { %1084 = vst.msk [vmem:[%s2047_s1 + $0x6] sm:$0x1] %vm723_vm11, %v719_v50   ;;  %vm862_vm11 = vcmask 1023000  }
  0xff   :  { %1087 = vst.msk [vmem:[%s2047_s1 + $0x30] sm:$0x1] %vm734_vm12, %v733_v51   ;;  %v872_v52 = vpop.permute.xlu2 %871  }
 0x100   :  { %1088 = vst.msk [vmem:[%s2047_s1 + $0x30] sm:$0x1] %vm737_vm13, %v733_v51  }
 0x101   :  { %1126 = vst.msk [vmem:[%s2047_s1 + $0x2b] sm:$0x1] %vm873_vm14, %v872_v52  }
 0x102   :  { %1127 = vst.msk [vmem:[%s2047_s1 + $0x2b] sm:$0x1] %vm876_vm15, %v872_v52  }
 0x104   :  { %v761_v53 = vpop.permute.xlu0 %760  }
 0x105   :  { %1095 = vst.msk [vmem:[%s2047_s1 + $0x2f] sm:$0x1] %vm762_vm1, %v761_v53   ;;  %v775_v54 = vpop.permute.xlu1 %774  }
 0x106   :  { %1096 = vst.msk [vmem:[%s2047_s1 + $0x2f] sm:$0x1] %vm765_vm2, %v761_v53  }
 0x107   :  { %1099 = vst.msk [vmem:[%s2047_s1 + $0x4] sm:$0x1] %vm776_vm3, %v775_v54  }
 0x108   :  { %1100 = vst.msk [vmem:[%s2047_s1 + $0x4] sm:$0x1] %vm779_vm4, %v775_v54  }
 0x10c   :  { %v803_v55 = vpop.permute.xlu0 %802  }
 0x10d   :  { %1107 = vst.msk [vmem:[%s2047_s1 + $0x3] sm:$0x1] %vm804_vm5, %v803_v55   ;;  %v817_v56 = vpop.permute.xlu1 %816  }
 0x10e   :  { %1108 = vst.msk [vmem:[%s2047_s1 + $0x3] sm:$0x1] %vm807_vm0, %v803_v55  }
 0x10f   :  { %1111 = vst.msk [vmem:[%s2047_s1 + $0x2d] sm:$0x1] %vm818_vm6, %v817_v56  }
 0x110   :  { %1112 = vst.msk [vmem:[%s2047_s1 + $0x2d] sm:$0x1] %vm821_vm7, %v817_v56  }
 0x114   :  { %v845_v57 = vpop.permute.xlu0 %844  }
 0x115   :  { %1119 = vst.msk [vmem:[%s2047_s1 + $0x2c] sm:$0x1] %vm846_vm8, %v845_v57   ;;  %v858_v58 = vpop.permute.xlu1 %857  }
 0x116   :  { %1120 = vst.msk [vmem:[%s2047_s1 + $0x2c] sm:$0x1] %vm849_vm9, %v845_v57  }
 0x117   :  { %1122 = vst.msk [vmem:[%s2047_s1 + $0x1] sm:$0x1] %vm859_vm10, %v858_v58  }
 0x118   :  { %1123 = vst.msk [vmem:[%s2047_s1 + $0x1] sm:$0x1] %vm862_vm11, %v858_v58  }

// kernel: my_loss.1
= control target key start
LH: loop header
LB: loop body
LE: loop exit
PB: predicated region body
PF: predicated region fallthrough
CT: control target
= control target key end

     0   :  { %vm172_vm0 = vcmask 1022976   ;;  %s1053_s0 = inlined_call_operand.vmem [shape: f32[64,125], index: 0, kind: input, shape index: {}]   ;;  %s1054_s1 = inlined_call_operand.vmem [shape: f32[64,125], index: 1, kind: input, shape index: {}]   ;;  %s1055_s2 = inlined_call_operand.hbm [shape: f32[1], index: 2, kind: output, shape index: {}]  }
   0x1   :  { %v698_v0 = vld [vmem:[%s1053_s0] sm:$0xff]  ;;  %v13_v1 = vld [vmem:[%s1053_s0 + $0x8] sm:$0xff]  ;;  %v14_v2 = vld [vmem:[%s1053_s0 + $0x10] sm:$0xff] }
   0x2   :  { %v15_v3 = vld [vmem:[%s1053_s0 + $0x18] sm:$0xff]  ;;  %v16_v4 = vld [vmem:[%s1053_s0 + $0x20] sm:$0xff]  ;;  %v17_v5 = vld [vmem:[%s1053_s0 + $0x28] sm:$0xff]  ;;  %v29_v6 = vmax.f32 %v13_v1, 0.0  ;;  %v30_v7 = vmax.f32 %v14_v2, 0.0  ;;  %v28_v17 = vmax.f32 %v698_v0, 0.0 }
   0x3   :  { %v18_v8 = vld [vmem:[%s1053_s0 + $0x30] sm:$0xff]  ;;  %v19_v9 = vld [vmem:[%s1053_s0 + $0x38] sm:$0xff]  ;;  %v31_v10 = vmax.f32 %v15_v3, 0.0  ;;  %v32_v11 = vmax.f32 %v16_v4, 0.0  ;;  %v33_v12 = vmax.f32 %v17_v5, 0.0  ;;  %v724_v13 = vld [vmem:[%s1054_s1] sm:$0xff] }
   0x4   :  { %v34_v14 = vmax.f32 %v18_v8, 0.0  ;;  %v35_v15 = vmax.f32 %v19_v9, 0.0  ;;  %v37_v16 = vmin.f32 %v29_v6, 1.0  ;;  %v38_v18 = vmin.f32 %v30_v7, 1.0  ;;  %v732_v22 = vld [vmem:[%s1054_s1 + $0x8] sm:$0xff]  ;;  %v737_v27 = vld [vmem:[%s1054_s1 + $0x10] sm:$0xff] }
   0x5   :  { %v39_v19 = vmin.f32 %v31_v10, 1.0  ;;  %v40_v20 = vmin.f32 %v32_v11, 1.0  ;;  %v215_v21 = vsub.f32 %v698_v0, %v724_v13  ;;  %v41_v23 = vmin.f32 %v33_v12, 1.0 }
   0x6   :  { %v42_v24 = vmin.f32 %v34_v14, 1.0  ;;  %v43_v25 = vmin.f32 %v35_v15, 1.0  ;;  %v85_v26 = vmul.f32 2.0, %v37_v16  ;;  %v86_v28 = vmul.f32 2.0, %v38_v18 }
   0x7   :  { %v87_v29 = vmul.f32 2.0, %v39_v19  ;;  %v88_v30 = vmul.f32 2.0, %v40_v20  ;;  %v216_v31 = vsub.f32 %v13_v1, %v732_v22 }
   0x8   :  { %7 = vsyncpa [#allocation3], 0  ;;  %v743_v32 = vld [vmem:[%s1054_s1 + $0x18] sm:$0xff]  ;;  %v89_v33 = vmul.f32 2.0, %v41_v23  ;;  %v90_v34 = vmul.f32 2.0, %v42_v24  ;;  %v91_v35 = vmul.f32 2.0, %v43_v25  ;;  %v217_v36 = vsub.f32 %v14_v2, %v737_v27 }
   0x9   :  { %v749_v37 = vld [vmem:[%s1054_s1 + $0x20] sm:$0xff]  ;;  %v751_v38 = vadd.f32 -1.0, %v85_v26  ;;  %v753_v39 = vadd.f32 -1.0, %v86_v28  ;;  %v755_v40 = vadd.f32 -1.0, %v87_v29  ;;  %v218_v41 = vsub.f32 %v15_v3, %v743_v32  ;;  %v761_v42 = vld [vmem:[%s1054_s1 + $0x28] sm:$0xff]  ;;  %v766_v43 = vld [vmem:[%s1054_s1 + $0x30] sm:$0xff] }
   0xa   :  { %v771_v44 = vld [vmem:[%s1054_s1 + $0x38] sm:$0xff]  ;;  %v773_v45 = vadd.f32 -1.0, %v88_v30  ;;  %v775_v46 = vadd.f32 -1.0, %v89_v33  ;;  %v777_v47 = vadd.f32 -1.0, %v90_v34  ;;  %v219_v48 = vsub.f32 %v16_v4, %v749_v37  ;;  %s558_s9 = sshll.u32 %s1055_s2, 4  ;;  %s559_s9 = int_to_ptr.hbm [resolvable:$true] %s558_s9 }
   0xb   :  { %v220_v49 = vsub.f32 %v17_v5, %v761_v42  ;;  %v221_v50 = vsub.f32 %v18_v8, %v766_v43  ;;  %v222_v51 = vsub.f32 %v19_v9, %v771_v44  ;;  %v783_v52 = vmul.f32 %v215_v21, %v215_v21 }
   0xc   :  { %v785_v53 = vmul.f32 %v216_v31, %v216_v31  ;;  %v787_v54 = vmul.f32 %v217_v36, %v217_v36  ;;  %v789_v55 = vmul.f32 %v218_v41, %v218_v41  ;;  %v791_v56 = vmul.f32 %v219_v48, %v219_v48 }
   0xd   :  { %v793_v57 = vmul.f32 %v220_v49, %v220_v49  ;;  %v795_v58 = vmul.f32 %v221_v50, %v221_v50  ;;  %v797_v59 = vmul.f32 %v222_v51, %v222_v51  ;;  %v279_v60 = vsel %vm172_vm0, %v783_v52, 0.0 }
   0xe   :  { %v583_v61 = vadd.f32 -1.0, %v91_v35  ;;  %v280_v62 = vsel %vm172_vm0, %v785_v53, 0.0  ;;  %v282_v63 = vsel %vm172_vm0, %v787_v54, 0.0  ;;  %v284_v0 = vsel %vm172_vm0, %v789_v55, 0.0 }
   0xf   :  { %v281_v1 = vadd.f32 %v280_v62, %v279_v60  ;;  %v286_v2 = vsel %vm172_vm0, %v791_v56, 0.0  ;;  %v288_v3 = vsel %vm172_vm0, %v793_v57, 0.0  ;;  %v290_v4 = vsel %vm172_vm0, %v795_v58, 0.0 }
  0x10   :  { %v292_v5 = vsel %vm172_vm0, %v797_v59, 0.0  ;;  %v36_v6 = vmin.f32 %v28_v17, 1.0  ;;  %vm44_vm1 = vcmp.ge.f32.partialorder %v724_v13, 1.0  ;;  %vm45_vm2 = vcmp.ge.f32.partialorder %v732_v22, 1.0 }
  0x11   :  { %v283_v7 = vadd.f32 %v282_v63, %v281_v1  ;;  %vm46_vm3 = vcmp.ge.f32.partialorder %v737_v27, 1.0  ;;  %vm47_vm4 = vcmp.ge.f32.partialorder %v743_v32, 1.0  ;;  %vm48_vm5 = vcmp.ge.f32.partialorder %v749_v37, 1.0 }
  0x12   :  { %v84_v8 = vmul.f32 2.0, %v36_v6  ;;  %vm49_vm6 = vcmp.ge.f32.partialorder %v761_v42, 1.0  ;;  %vm50_vm7 = vcmp.ge.f32.partialorder %v766_v43, 1.0  ;;  %vm51_vm8 = vcmp.ge.f32.partialorder %v771_v44, 1.0 }
  0x13   :  { %v285_v9 = vadd.f32 %v284_v0, %v283_v7  ;;  %v678_v10 = vmov 0.0   ;;  %vm400_vm9 = vcmask 1015808   ;;  %vm231_vm10 = vcmp.gt.f32.partialorder %v724_v13, 0.0 }
  0x14   :  { %v824_v11 = vsel %vm44_vm1, 1.0, %v678_v10  ;;  %v827_v12 = vsel %vm45_vm2, 1.0, %v678_v10  ;;  %v830_v14 = vsel %vm46_vm3, 1.0, %v678_v10  ;;  %v576_v15 = vadd.f32 -1.0, %v84_v8 }
  0x15   :  { %v833_v16 = vsel %vm47_vm4, 1.0, %v678_v10  ;;  %v836_v17 = vsel %vm48_vm5, 1.0, %v678_v10  ;;  %v839_v18 = vsel %vm49_vm6, 1.0, %v678_v10  ;;  %v287_v19 = vadd.f32 %v286_v2, %v285_v9 }
  0x16   :  { %v842_v20 = vsel %vm50_vm7, 1.0, %v678_v10  ;;  %v845_v21 = vsel %vm51_vm8, 1.0, %v678_v10  ;;  %v68_v23 = vmul.f32 2.0, %v824_v11  ;;  %v69_v24 = vmul.f32 2.0, %v827_v12 }
  0x17   :  { %v70_v25 = vmul.f32 2.0, %v830_v14  ;;  %v71_v26 = vmul.f32 2.0, %v833_v16  ;;  %v72_v28 = vmul.f32 2.0, %v836_v17  ;;  %v289_v29 = vadd.f32 %v288_v3, %v287_v19 }
  0x18   :  { %v73_v30 = vmul.f32 2.0, %v839_v18  ;;  %v74_v31 = vmul.f32 2.0, %v842_v20  ;;  %v75_v33 = vmul.f32 2.0, %v845_v21  ;;  %v76_v34 = vsub.f32 1.0, %v68_v23 }
  0x19   :  { %v77_v35 = vsub.f32 1.0, %v69_v24  ;;  %v78_v36 = vsub.f32 1.0, %v70_v25  ;;  %v79_v41 = vsub.f32 1.0, %v71_v26  ;;  %v291_v48 = vadd.f32 %v290_v4, %v289_v29 }
  0x1a   :  { %v80_v49 = vsub.f32 1.0, %v72_v28  ;;  %v81_v50 = vsub.f32 1.0, %v73_v30  ;;  %v82_v51 = vsub.f32 1.0, %v74_v31  ;;  %v83_v60 = vsub.f32 1.0, %v75_v33 }
  0x1b   :  { %v100_v62 = vmul.f32 %v576_v15, %v76_v34  ;;  %v101_v63 = vmul.f32 %v751_v38, %v77_v35  ;;  %v102_v0 = vmul.f32 %v753_v39, %v78_v36  ;;  %v293_v1 = vadd.f32 %v292_v5, %v291_v48 }
  0x1c   :  { %v103_v2 = vmul.f32 %v755_v40, %v79_v41  ;;  %v104_v3 = vmul.f32 %v773_v45, %v80_v49  ;;  %v105_v6 = vmul.f32 %v775_v46, %v81_v50  ;;  %v106_v7 = vmul.f32 %v777_v47, %v82_v51 }
  0x1d   :  { %v107_v8 = vmul.f32 %v583_v61, %v83_v60  ;;  %v108_v4 = vmul.f32 1.442695, %v100_v62  ;;  %v110_v9 = vmul.f32 1.442695, %v101_v63  ;;  %v294_v19 = vrot.slane %v293_v1, 4 }
  0x1e   :  { %v112_v23 = vmul.f32 1.442695, %v102_v0  ;;  %v114_v24 = vmul.f32 1.442695, %v103_v2  ;;  %v116_v15 = vmul.f32 1.442695, %v104_v3 }
  0x1f   :  { %624 = vpow2.f32 %v108_v4  ;;  %v118_v38 = vmul.f32 1.442695, %v105_v6  ;;  %v120_v25 = vmul.f32 1.442695, %v106_v7  ;;  %v295_v39 = vadd.f32 %v294_v19, %v293_v1 }
  0x20   :  { %626 = vpow2.f32 %v110_v9  ;;  %v122_v5 = vmul.f32 1.442695, %v107_v8  ;;  %v148_v40 = vmul.f32 0.999, %v824_v11  ;;  %v149_v45 = vmul.f32 0.999, %v827_v12 }
  0x21   :  { %628 = vpow2.f32 %v112_v23  ;;  %v150_v46 = vmul.f32 0.999, %v830_v14  ;;  %v151_v47 = vmul.f32 0.999, %v833_v16  ;;  %v296_v61 = vrot.slane %v295_v39, 2 }
  0x22   :  { %630 = vpow2.f32 %v114_v24  ;;  %v152_v26 = vmul.f32 0.999, %v836_v17  ;;  %v153_v28 = vmul.f32 0.999, %v839_v18  ;;  %v154_v29 = vmul.f32 0.999, %v842_v20 }
  0x23   :  { %632 = vpow2.f32 %v116_v15  ;;  %v155_v30 = vmul.f32 0.999, %v845_v21  ;;  %v297_v31 = vadd.f32 %v296_v61, %v295_v39  ;;  %v869_v33 = vadd.f32 0.001, %v148_v40 }
  0x24   :  { %634 = vpow2.f32 %v118_v38  ;;  %v871_v34 = vadd.f32 0.001, %v149_v45  ;;  %v873_v36 = vadd.f32 0.001, %v150_v46  ;;  %v875_v41 = vadd.f32 0.001, %v151_v47 }
  0x25   :  { %v625_v35 = vpop.eup %624  ;;  %636 = vpow2.f32 %v120_v25  ;;  %v877_v48 = vadd.f32 0.001, %v152_v26  ;;  %v298_v50 = vrot.slane %v297_v31, 1  ;;  %v879_v60 = vadd.f32 0.001, %v153_v28 }
  0x26   :  { %v627_v49 = vpop.eup %626  ;;  %638 = vpow2.f32 %v122_v5  ;;  %v124_v51 = vadd.f32 1.0, %v625_v35  ;;  %v881_v0 = vadd.f32 0.001, %v154_v29  ;;  %v883_v1 = vadd.f32 0.001, %v155_v30 }
  0x27   :  { %v629_v62 = vpop.eup %628  ;;  %v125_v63 = vadd.f32 1.0, %v627_v49  ;;  %v299_v3 = vadd.f32 %v298_v50, %v297_v31  ;;  %vm232_vm11 = vcmp.gt.f32.partialorder %v732_v22, 0.0  ;;  %vm233_vm12 = vcmp.gt.f32.partialorder %v737_v27, 0.0 }
  0x28   :  { %v631_v2 = vpop.eup %630  ;;  %v126_v6 = vadd.f32 1.0, %v629_v62  ;;  %640 = vlog2.f32 %v124_v51  ;;  %vm234_vm13 = vcmp.gt.f32.partialorder %v743_v32, 0.0  ;;  %vm235_vm14 = vcmp.gt.f32.partialorder %v749_v37, 0.0 }
  0x29   :  { %v633_v7 = vpop.eup %632  ;;  %v127_v8 = vadd.f32 1.0, %v631_v2  ;;  %642 = vlog2.f32 %v125_v63  ;;  %v421_v9 = vsel %vm400_vm9, %v299_v3, 0.0  ;;  %vm236_vm15 = vcmp.gt.f32.partialorder %v761_v42, 0.0 }
  0x2a   :  { %v635_v4 = vpop.eup %634  ;;  %v128_v19 = vadd.f32 1.0, %v633_v7  ;;  %644 = vlog2.f32 %v126_v6  ;;  %422 = vadd.xlane.f32.xlu1 %v421_v9  ;;  %vm237_vm1 = vcmp.gt.f32.partialorder %v766_v43, 0.0  ;;  %v584_v25 = vsel %vm231_vm10, 1.0, %v678_v10 }
  0x2b   :  { %v637_v23 = vpop.eup %636  ;;  %v129_v24 = vadd.f32 1.0, %v635_v4  ;;  %646 = vlog2.f32 %v127_v8  ;;  %v585_v39 = vsel %vm232_vm11, 1.0, %v678_v10  ;;  %vm238_vm2 = vcmp.gt.f32.partialorder %v771_v44, 0.0 }
  0x2c   :  { %v639_v15 = vpop.eup %638  ;;  %v130_v38 = vadd.f32 1.0, %v637_v23  ;;  %648 = vlog2.f32 %v128_v19  ;;  %v586_v40 = vsel %vm233_vm12, 1.0, %v678_v10  ;;  %v587_v46 = vsel %vm234_vm13, 1.0, %v678_v10 }
  0x2d   :  { %v131_v5 = vadd.f32 1.0, %v639_v15  ;;  %650 = vlog2.f32 %v129_v24  ;;  %v588_v47 = vsel %vm235_vm14, 1.0, %v678_v10  ;;  %v589_v61 = vsel %vm236_vm15, 1.0, %v678_v10 }
  0x2e   :  { %v641_v45 = vpop.eup %640  ;;  %652 = vlog2.f32 %v130_v38  ;;  %v329_v29 = vsel %vm172_vm0, %v584_v25, 0.0  ;;  %v330_v30 = vsel %vm172_vm0, %v585_v39, 0.0  ;;  %v590_v49 = vsel %vm237_vm1, 1.0, %v678_v10 }
  0x2f   :  { %v643_v26 = vpop.eup %642  ;;  %v133_v28 = vmul.f32 0.6931472, %v641_v45  ;;  %654 = vlog2.f32 %v131_v5  ;;  %v331_v50 = vadd.f32 %v330_v30, %v329_v29  ;;  %v332_v51 = vsel %vm172_vm0, %v586_v40, 0.0 }
  0x30   :  { %v645_v31 = vpop.eup %644  ;;  %v135_v35 = vmul.f32 0.6931472, %v643_v26  ;;  %v591_v3 = vsel %vm238_vm2, 1.0, %v678_v10  ;;  %v334_v6 = vsel %vm172_vm0, %v587_v46, 0.0  ;;  %v336_v19 = vsel %vm172_vm0, %v588_v47, 0.0 }
  0x31   :  { %v647_v62 = vpop.eup %646  ;;  %v137_v63 = vmul.f32 0.6931472, %v645_v31  ;;  %v164_v2 = vmul.f32 %v869_v33, %v133_v28  ;;  %v333_v9 = vadd.f32 %v332_v51, %v331_v50  ;;  %v338_v33 = vsel %vm172_vm0, %v589_v61, 0.0 }
  0x32   :  { %v649_v7 = vpop.eup %648  ;;  %v139_v8 = vmul.f32 0.6931472, %v647_v62  ;;  %v165_v4 = vmul.f32 %v871_v34, %v135_v35  ;;  %vm255_vm3 = vcmp.gt.f32.partialorder %v724_v13, 2000.0  ;;  %vm256_vm4 = vcmp.gt.f32.partialorder %v732_v22, 2000.0 }
  0x33   :  { %v651_v23 = vpop.eup %650  ;;  %v141_v24 = vmul.f32 0.6931472, %v649_v7  ;;  %v166_v15 = vmul.f32 %v873_v36, %v137_v63  ;;  %v173_v38 = vsel %vm172_vm0, %v164_v2, 0.0  ;;  %v335_v29 = vadd.f32 %v334_v6, %v333_v9 }
  0x34   :  { %v653_v5 = vpop.eup %652  ;;  %v143_v45 = vmul.f32 0.6931472, %v651_v23  ;;  %v167_v26 = vmul.f32 %v875_v41, %v139_v8  ;;  %v174_v28 = vsel %vm172_vm0, %v165_v4, 0.0  ;;  %v340_v41 = vsel %vm172_vm0, %v590_v49, 0.0 }
  0x35   :  { %v655_v30 = vpop.eup %654  ;;  %v145_v34 = vmul.f32 0.6931472, %v653_v5  ;;  %v168_v31 = vmul.f32 %v877_v48, %v141_v24  ;;  %v175_v35 = vadd.f32 %v174_v28, %v173_v38  ;;  %v176_v50 = vsel %vm172_vm0, %v166_v15, 0.0 }
  0x36   :  { %v147_v51 = vmul.f32 0.6931472, %v655_v30  ;;  %v169_v36 = vmul.f32 %v879_v60, %v143_v45  ;;  %v178_v62 = vsel %vm172_vm0, %v167_v26, 0.0  ;;  %v337_v63 = vadd.f32 %v336_v19, %v335_v29 }
  0x37   :  { %v170_v2 = vmul.f32 %v881_v0, %v145_v34  ;;  %v177_v7 = vadd.f32 %v176_v50, %v175_v35  ;;  %v300_v6 = vmul.f32 %v584_v25, %v783_v52  ;;  %v180_v8 = vsel %vm172_vm0, %v168_v31, 0.0 }
  0x38   :  { %v339_v4 = vadd.f32 %v338_v33, %v337_v63  ;;  %v301_v48 = vmul.f32 %v585_v39, %v785_v53  ;;  %v171_v9 = vmul.f32 %v883_v1, %v147_v51  ;;  %v342_v60 = vsel %vm172_vm0, %v591_v3, 0.0 }
  0x39   :  { %v179_v23 = vadd.f32 %v178_v62, %v177_v7  ;;  %v302_v24 = vmul.f32 %v586_v40, %v787_v54  ;;  %v182_v19 = vsel %vm172_vm0, %v169_v36, 0.0  ;;  %v303_v15 = vmul.f32 %v587_v46, %v789_v55 }
  0x3a   :  { %v341_v0 = vadd.f32 %v340_v41, %v339_v4  ;;  %v184_v25 = vsel %vm172_vm0, %v170_v2, 0.0  ;;  %v304_v5 = vmul.f32 %v588_v47, %v791_v56  ;;  %v308_v33 = vsel %vm172_vm0, %v300_v6, 0.0 }
  0x3b   :  { %v181_v38 = vadd.f32 %v180_v8, %v179_v23  ;;  %v305_v1 = vmul.f32 %v589_v61, %v793_v57  ;;  %v309_v45 = vsel %vm172_vm0, %v301_v48, 0.0  ;;  %v311_v26 = vsel %vm172_vm0, %v302_v24, 0.0 }
  0x3c   :  { %v343_v39 = vadd.f32 %v342_v60, %v341_v0  ;;  %v186_v28 = vsel %vm172_vm0, %v171_v9, 0.0  ;;  %v306_v29 = vmul.f32 %v590_v49, %v795_v58  ;;  %v310_v46 = vadd.f32 %v309_v45, %v308_v33 }
  0x3d   :  { %v183_v40 = vadd.f32 %v182_v19, %v181_v38  ;;  %v307_v34 = vmul.f32 %v591_v3, %v797_v59  ;;  %v313_v47 = vsel %vm172_vm0, %v303_v15, 0.0  ;;  %v194_v31 = vsel %vm172_vm0, %v824_v11, 0.0 }
  0x3e   :  { %v344_v30 = vrot.slane %v343_v39, 4  ;;  %v312_v61 = vadd.f32 %v311_v26, %v310_v46  ;;  %v195_v50 = vsel %vm172_vm0, %v827_v12, 0.0  ;;  %v197_v51 = vsel %vm172_vm0, %v830_v14, 0.0 }
  0x3f   :  { %v185_v35 = vadd.f32 %v184_v25, %v183_v40  ;;  %v315_v49 = vsel %vm172_vm0, %v304_v5, 0.0  ;;  %v317_v62 = vsel %vm172_vm0, %v305_v1, 0.0  ;;  %v196_v63 = vadd.f32 %v195_v50, %v194_v31 }
  0x40   :  { %v345_v36 = vadd.f32 %v344_v30, %v343_v39  ;;  %v314_v2 = vadd.f32 %v313_v47, %v312_v61  ;;  %v319_v7 = vsel %vm172_vm0, %v306_v29, 0.0  ;;  %v199_v11 = vsel %vm172_vm0, %v833_v16, 0.0 }
  0x41   :  { %v187_v3 = vadd.f32 %v186_v28, %v185_v35  ;;  %v321_v6 = vsel %vm172_vm0, %v307_v34, 0.0  ;;  %v198_v12 = vadd.f32 %v197_v51, %v196_v63  ;;  %v201_v14 = vsel %vm172_vm0, %v836_v17, 0.0 }
  0x42   :  { %v346_v41 = vrot.slane %v345_v36, 2  ;;  %v316_v4 = vadd.f32 %v315_v49, %v314_v2  ;;  %v203_v48 = vsel %vm172_vm0, %v839_v18, 0.0  ;;  %v205_v9 = vsel %vm172_vm0, %v842_v20, 0.0 }
  0x43   :  { %v188_v8 = vrot.slane %v187_v3, 4  ;;  %v200_v60 = vadd.f32 %v199_v11, %v198_v12  ;;  %v207_v16 = vsel %vm172_vm0, %v845_v21, 0.0  ;;  %vm257_vm5 = vcmp.gt.f32.partialorder %v737_v27, 2000.0 }
  0x44   :  { %v347_v23 = vadd.f32 %v346_v41, %v345_v36  ;;  %v318_v19 = vadd.f32 %v317_v62, %v316_v4  ;;  %vm258_vm6 = vcmp.gt.f32.partialorder %v743_v32, 2000.0  ;;  %vm259_vm7 = vcmp.gt.f32.partialorder %v749_v37, 2000.0 }
  0x45   :  { %v189_v24 = vadd.f32 %v188_v8, %v187_v3  ;;  %v202_v0 = vadd.f32 %v201_v14, %v200_v60  ;;  %vm260_vm8 = vcmp.gt.f32.partialorder %v761_v42, 2000.0  ;;  %v592_v21 = vsel %vm255_vm3, 1.0, %v678_v10 }
  0x46   :  { %v348_v17 = vrot.slane %v347_v23, 1  ;;  %v320_v20 = vadd.f32 %v319_v7, %v318_v19  ;;  %v593_v38 = vsel %vm256_vm4, 1.0, %v678_v10  ;;  %v594_v22 = vsel %vm257_vm5, 1.0, %v678_v10 }
  0x47   :  { %v190_v18 = vrot.slane %v189_v24, 2  ;;  %v204_v13 = vadd.f32 %v203_v48, %v202_v0  ;;  %vm261_vm10 = vcmp.gt.f32.partialorder %v766_v43, 2000.0  ;;  %v595_v32 = vsel %vm258_vm6, 1.0, %v678_v10 }
  0x48   :  { %v349_v15 = vadd.f32 %v348_v17, %v347_v23  ;;  %v322_v27 = vadd.f32 %v321_v6, %v320_v20  ;;  %v596_v33 = vsel %vm259_vm7, 1.0, %v678_v10  ;;  %v350_v39 = vmul.f32 %v592_v21, %v783_v52 }
  0x49   :  { %v191_v25 = vadd.f32 %v190_v18, %v189_v24  ;;  %v206_v5 = vadd.f32 %v205_v9, %v204_v13  ;;  %v351_v26 = vmul.f32 %v593_v38, %v785_v53  ;;  %v352_v40 = vmul.f32 %v594_v22, %v787_v54 }
  0x4a   :  { %v441_v37 = vsel %vm400_vm9, %v349_v15, 0.0  ;;  %v323_v45 = vrot.slane %v322_v27, 4  ;;  %vm262_vm11 = vcmp.gt.f32.partialorder %v771_v44, 2000.0  ;;  %v597_v29 = vsel %vm260_vm8, 1.0, %v678_v10 }
  0x4b   :  { %v192_v1 = vrot.slane %v191_v25, 1  ;;  %442 = vadd.xlane.f32.xlu2 %v441_v37  ;;  %v208_v28 = vadd.f32 %v207_v16, %v206_v5  ;;  %v353_v46 = vmul.f32 %v595_v32, %v789_v55  ;;  %v598_v52 = vsel %vm261_vm10, 1.0, %v678_v10 }
  0x4c   :  { %v324_v34 = vadd.f32 %v323_v45, %v322_v27  ;;  %v354_v47 = vmul.f32 %v596_v33, %v791_v56  ;;  %v358_v54 = vsel %vm172_vm0, %v350_v39, 0.0  ;;  %v359_v31 = vsel %vm172_vm0, %v351_v26, 0.0 }
  0x4d   :  { %v193_v30 = vadd.f32 %v192_v1, %v191_v25  ;;  %v209_v53 = vrot.slane %v208_v28, 4  ;;  %v361_v35 = vsel %vm172_vm0, %v352_v40, 0.0  ;;  %v360_v50 = vadd.f32 %v359_v31, %v358_v54 }
  0x4e   :  { %v325_v61 = vrot.slane %v324_v34, 2  ;;  %v599_v43 = vsel %vm262_vm11, 1.0, %v678_v10  ;;  %v355_v51 = vmul.f32 %v597_v29, %v793_v57  ;;  %v363_v56 = vsel %vm172_vm0, %v353_v46, 0.0 }
  0x4f   :  { %v401_v42 = vsel %vm400_vm9, %v193_v30, 0.0  ;;  %v210_v55 = vadd.f32 %v209_v53, %v208_v28  ;;  %v356_v49 = vmul.f32 %v598_v52, %v795_v58  ;;  %v362_v62 = vadd.f32 %v361_v35, %v360_v50 }
  0x50   :  { %402 = vadd.xlane.f32.xlu0 %v401_v42  ;;  %v326_v36 = vadd.f32 %v325_v61, %v324_v34  ;;  %v379_v63 = vsel %vm172_vm0, %v592_v21, 0.0  ;;  %v365_v2 = vsel %vm172_vm0, %v354_v47, 0.0  ;;  %v380_v7 = vsel %vm172_vm0, %v593_v38, 0.0 }
  0x51   :  { %v211_v3 = vrot.slane %v210_v55, 2  ;;  %v382_v11 = vsel %vm172_vm0, %v594_v22, 0.0  ;;  %v364_v44 = vadd.f32 %v363_v56, %v362_v62  ;;  %v381_v10 = vadd.f32 %v380_v7, %v379_v63 }
  0x52   :  { %v327_v41 = vrot.slane %v326_v36, 1  ;;  %v357_v57 = vmul.f32 %v599_v43, %v797_v59  ;;  %v367_v12 = vsel %vm172_vm0, %v355_v51, 0.0  ;;  %v384_v58 = vsel %vm172_vm0, %v595_v32, 0.0 }
  0x53   :  { %v212_v6 = vadd.f32 %v211_v3, %v210_v55  ;;  %v366_v8 = vadd.f32 %v365_v2, %v364_v44  ;;  %v383_v4 = vadd.f32 %v382_v11, %v381_v10  ;;  %v369_v9 = vsel %vm172_vm0, %v356_v49, 0.0 }
  0x54   :  { %v328_v14 = vadd.f32 %v327_v41, %v326_v36  ;;  %v386_v23 = vsel %vm172_vm0, %v596_v33, 0.0  ;;  %v371_v59 = vsel %vm172_vm0, %v357_v57, 0.0  ;;  %v388_v17 = vsel %vm172_vm0, %v597_v29, 0.0 }
  0x55   :  { %v213_v48 = vrot.slane %v212_v6, 1  ;;  %v368_v16 = vadd.f32 %v367_v12, %v366_v8  ;;  %v385_v24 = vadd.f32 %v384_v58, %v383_v4  ;;  %v390_v21 = vsel %vm172_vm0, %v598_v52, 0.0 }
  0x56   :  { %v431_v60 = vsel %vm400_vm9, %v328_v14, 0.0  ;;  %v392_v38 = vsel %vm172_vm0, %v599_v43, 0.0 }
  0x57   :  { %432 = vadd.xlane.f32.xlu1 %v431_v60  ;;  %v214_v19 = vadd.f32 %v213_v48, %v212_v6  ;;  %v370_v0 = vadd.f32 %v369_v9, %v368_v16  ;;  %v387_v18 = vadd.f32 %v386_v23, %v385_v24 }
  0x59   :  { %v411_v20 = vsel %vm400_vm9, %v214_v19, 0.0  ;;  %v372_v15 = vadd.f32 %v371_v59, %v370_v0  ;;  %v389_v13 = vadd.f32 %v388_v17, %v387_v18 }
  0x5a   :  { %412 = vadd.xlane.f32.xlu0 %v411_v20 }
  0x5b   :  { %v373_v22 = vrot.slane %v372_v15, 4  ;;  %v391_v25 = vadd.f32 %v390_v21, %v389_v13 }
  0x5d   :  { %v374_v27 = vadd.f32 %v373_v22, %v372_v15  ;;  %v393_v32 = vadd.f32 %v392_v38, %v391_v25 }
  0x5f   :  { %v375_v37 = vrot.slane %v374_v27, 2  ;;  %v394_v5 = vrot.slane %v393_v32, 4 }
  0x61   :  { %v376_v33 = vadd.f32 %v375_v37, %v374_v27  ;;  %v395_v39 = vadd.f32 %v394_v5, %v393_v32 }
  0x63   :  { %v377_v1 = vrot.slane %v376_v33, 1  ;;  %v396_v45 = vrot.slane %v395_v39, 2 }
  0x65   :  { %v378_v26 = vadd.f32 %v377_v1, %v376_v33  ;;  %v397_v40 = vadd.f32 %v396_v45, %v395_v39 }
  0x67   :  { %v451_v28 = vsel %vm400_vm9, %v378_v26, 0.0  ;;  %v398_v29 = vrot.slane %v397_v40, 1 }
  0x68   :  { %452 = vadd.xlane.f32.xlu2 %v451_v28 }
  0x69   :  { %v399_v46 = vadd.f32 %v398_v29, %v397_v40 }
  0x6b   :  { %v461_v30 = vsel %vm400_vm9, %v399_v46, 0.0 }
  0x6c   :  { %462 = vadd.xlane.f32.xlu0 %v461_v30 }
  0x9d   :  { %v423_v34 = vpop.xlane.xlu1 %422 }
  0x9e   :  { %v424_v54 = vrot.slane %v423_v34, 4 }
  0xa0   :  { %v425_v61 = vadd.f32 %v424_v54, %v423_v34 }
  0xa2   :  { %v426_v36 = vrot.slane %v425_v61, 2 }
  0xa4   :  { %v427_v41 = vadd.f32 %v426_v36, %v425_v61 }
  0xa6   :  { %v428_v12 = vrot.slane %v427_v41, 1 }
  0xa8   :  { %v429_v48 = vadd.f32 %v428_v12, %v427_v41 }
  0xbe   :  { %v443_v53 = vpop.xlane.xlu2 %442 }
  0xbf   :  { %v444_v42 = vrot.slane %v443_v53, 4 }
  0xc1   :  { %v445_v43 = vadd.f32 %v444_v42, %v443_v53 }
  0xc3   :  { %v403_v52 = vpop.xlane.xlu0 %402  ;;  %v446_v2 = vrot.slane %v445_v43, 2 }
  0xc4   :  { %v404_v47 = vrot.slane %v403_v52, 4 }
  0xc5   :  { %v447_v6 = vadd.f32 %v446_v2, %v445_v43 }
  0xc6   :  { %v405_v31 = vadd.f32 %v404_v47, %v403_v52 }
  0xc7   :  { %v448_v8 = vrot.slane %v447_v6, 1 }
  0xc8   :  { %v406_v35 = vrot.slane %v405_v31, 2 }
  0xc9   :  { %v449_v23 = vadd.f32 %v448_v8, %v447_v6 }
  0xca   :  { %v407_v50 = vadd.f32 %v406_v35, %v405_v31  ;;  %v433_v55 = vpop.xlane.xlu1 %432 }
  0xcb   :  { %v434_v51 = vrot.slane %v433_v55, 4 }
  0xcc   :  { %v408_v56 = vrot.slane %v407_v50, 1 }
  0xcd   :  { %v435_v49 = vadd.f32 %v434_v51, %v433_v55  ;;  %v413_v62 = vpop.xlane.xlu0 %412 }
  0xce   :  { %v409_v63 = vadd.f32 %v408_v56, %v407_v50  ;;  %v414_v3 = vrot.slane %v413_v62, 4 }
  0xcf   :  { %v436_v7 = vrot.slane %v435_v49, 2 }
  0xd0   :  { %600 = vpush %v409_v63  ;;  %v415_v11 = vadd.f32 %v414_v3, %v413_v62 }
  0xd1   :  { %v437_v44 = vadd.f32 %v436_v7, %v435_v49 }
  0xd2   :  { %v416_v10 = vrot.slane %v415_v11, 2 }
  0xd3   :  { %v438_v14 = vrot.slane %v437_v44, 1 }
  0xd4   :  { %v417_v57 = vadd.f32 %v416_v10, %v415_v11 }
  0xd5   :  { %v439_v9 = vadd.f32 %v438_v14, %v437_v44 }
  0xd6   :  { %v418_v58 = vrot.slane %v417_v57, 1 }
  0xd8   :  { %v419_v4 = vadd.f32 %v418_v58, %v417_v57 }
  0xda   :  { %602 = vpush %v419_v4 }
  0xdb   :  { %604 = vpush %v429_v48  ;;  %v453_v60 = vpop.xlane.xlu2 %452 }
  0xdc   :  { %606 = vpush %v439_v9  ;;  %v454_v16 = vrot.slane %v453_v60, 4 }
  0xdd   :  { %608 = vpush %v449_v23 }
  0xde   :  { %v455_v24 = vadd.f32 %v454_v16, %v453_v60 }
  0xdf   :  { %v463_v19 = vpop.xlane.xlu0 %462 }
  0xe0   :  { %v456_v59 = vrot.slane %v455_v24, 2  ;;  %v464_v17 = vrot.slane %v463_v19, 4 }
  0xe2   :  { %v457_v0 = vadd.f32 %v456_v59, %v455_v24  ;;  %v465_v18 = vadd.f32 %v464_v17, %v463_v19 }
  0xe4   :  { %v466_v20 = vrot.slane %v465_v18, 2  ;;  %v458_v21 = vrot.slane %v457_v0, 1 }
  0xe6   :  { %v467_v15 = vadd.f32 %v466_v20, %v465_v18  ;;  %v459_v13 = vadd.f32 %v458_v21, %v457_v0 }
  0xe8   :  { %610 = vpush %v459_v13  ;;  %v468_v38 = vrot.slane %v467_v15, 1 }
  0xea   :  { %v469_v22 = vadd.f32 %v468_v38, %v467_v15 }
  0xec   :  { %612 = vpush %v469_v22 }
 0x101   :  { %s1024_s1 = spop %600 }
 0x10b   :  { %s603_s12 = spop %602 }
 0x10c   :  { %s471_s13 = smul.f32 0.999, %s603_s12  ;;  %s1026_s14 = spop %604 }
 0x10d   :  { %s1028_s15 = spop %606 }
 0x10e   :  { %s472_s16 = sadd.f32 8.0, %s471_s13  ;;  %s609_s17 = spop %608 }
 0x10f   :  { %v492_v25 = vstv %s609_s17  ;;  %s511_s18 = ssub.f32 8000.0, %s609_s17 }
 0x110   :  { %v473_v27 = vstv %s472_s16  ;;  %656 = vrcp.f32 %v492_v25  ;;  %vm498_vm0 = vweird.f32 %v492_v25  ;;  %v502_v30 = vand.u32 2147483647, %v492_v25  ;;  %s510_s25 = ssub.f32 %s1026_s14, %s1028_s15 }
 0x111   :  { %658 = vrcp.f32 %v473_v27  ;;  %v512_v32 = vstv %s511_s18  ;;  %v483_v26 = vand.u32 2147483647, %v473_v27  ;;  %v485_v29 = vand.u32 2147483648, %v473_v27 }
 0x112   :  { %660 = vrcp.f32 %v512_v32  ;;  %v504_v47 = vand.u32 2147483648, %v492_v25  ;;  %vm479_vm13 = vweird.f32 %v473_v27  ;;  %v524_v31 = vand.u32 2147483648, %v512_v32 }
 0x113   :  { %vm1032_vm14 = vcmp.eq.f32.partialorder %v483_v26, 8.507059e+37  ;;  %v522_v50 = vand.u32 2147483647, %v512_v32  ;;  %v486_v43 = vor.u32 1.1754944e-38, %v485_v29  ;;  %vm518_vm3 = vweird.f32 %v512_v32 }
 0x114   :  { %v505_v36 = vor.u32 1.1754944e-38, %v504_v47  ;;  %vm503_vm4 = vcmp.eq.f32.partialorder %v502_v30, 8.507059e+37  ;;  %v525_v63 = vor.u32 1.1754944e-38, %v524_v31 }
 0x115   :  { %vm523_vm6 = vcmp.eq.f32.partialorder %v522_v50, 8.507059e+37 }
 0x116   :  { %v657_v37 = vpop.eup %656 }
 0x117   :  { %v659_v5 = vpop.eup %658  ;;  %v494_v33 = vmul.f32 %v657_v37, %v492_v25  ;;  %vm499_vm9 = vweird.f32 %v657_v37 }
 0x118   :  { %v475_v39 = vmul.f32 %v659_v5, %v473_v27  ;;  %v661_v1 = vpop.eup %660  ;;  %vm480_vm12 = vweird.f32 %v659_v5  ;;  %vm1037_vm15 = vmor %vm498_vm0, %vm499_vm9 }
 0x119   :  { %v495_v45 = vsub.f32 1.0, %v494_v33  ;;  %v514_v28 = vmul.f32 %v661_v1, %v512_v32  ;;  %s1030_s19 = spop %610  ;;  %vm519_vm1 = vweird.f32 %v661_v1  ;;  %vm481_vm2 = vmor %vm479_vm13, %vm480_vm12 }
 0x11a   :  { %v476_v40 = vsub.f32 1.0, %v475_v39  ;;  %vm520_vm5 = vmor %vm518_vm3, %vm519_vm1 }
 0x11b   :  { %v496_v46 = vmul.f32 %v657_v37, %v495_v45  ;;  %v515_v34 = vsub.f32 1.0, %v514_v28 }
 0x11c   :  { %v477_v52 = vmul.f32 %v659_v5, %v476_v40 }
 0x11d   :  { %v497_v54 = vadd.f32 %v657_v37, %v496_v46  ;;  %s613_s20 = spop %612  ;;  %v516_v61 = vmul.f32 %v661_v1, %v515_v34 }
 0x11e   :  { %v478_v35 = vadd.f32 %v659_v5, %v477_v52  ;;  %v530_v55 = vstv %s613_s20 }
 0x11f   :  { %v501_v51 = vsel %vm1037_vm15, %v657_v37, %v497_v54  ;;  %662 = vrcp.f32 %v530_v55  ;;  %v517_v49 = vadd.f32 %v661_v1, %v516_v61  ;;  %v542_v10 = vand.u32 2147483648, %v530_v55 }
 0x120   :  { %v482_v56 = vsel %vm481_vm2, %v659_v5, %v478_v35  ;;  %v506_v3 = vsel %vm503_vm4, %v505_v36, %v501_v51  ;;  %v540_v57 = vand.u32 2147483647, %v530_v55  ;;  %vm536_vm8 = vweird.f32 %v530_v55 }
 0x121   :  { %v487_v62 = vsel %vm1032_vm14, %v486_v43, %v482_v56  ;;  %v521_v2 = vsel %vm520_vm5, %v661_v1, %v517_v49  ;;  %v543_v58 = vor.u32 1.1754944e-38, %v542_v10 }
 0x122   :  { %614 = vpush %v487_v62  ;;  %v526_v7 = vsel %vm523_vm6, %v525_v63, %v521_v2  ;;  %vm541_vm11 = vcmp.eq.f32.partialorder %v540_v57, 8.507059e+37 }
 0x123   :  { %616 = vpush %v506_v3 }
 0x124   :  { %618 = vpush %v526_v7 }
 0x125   :  { %v663_v11 = vpop.eup %662 }
 0x126   :  { %v532_v41 = vmul.f32 %v663_v11, %v530_v55  ;;  %vm537_vm7 = vweird.f32 %v663_v11 }
 0x127   :  { %vm538_vm10 = vmor %vm536_vm8, %vm537_vm7 }
 0x128   :  { %v533_v44 = vsub.f32 1.0, %v532_v41 }
 0x12a   :  { %v534_v6 = vmul.f32 %v663_v11, %v533_v44 }
 0x12c   :  { %v535_v12 = vadd.f32 %v663_v11, %v534_v6 }
 0x12e   :  { %v539_v14 = vsel %vm538_vm10, %v663_v11, %v535_v12 }
 0x12f   :  { %v544_v8 = vsel %vm541_vm11, %v543_v58, %v539_v14 }
 0x130   :  { %620 = vpush %v544_v8 }
 0x153   :  { %s615_s21 = spop %614 }
 0x154   :  { %s489_s22 = smul.f32 %s615_s21, %s1024_s1  ;;  %s617_s23 = spop %616 }
 0x155   :  { %s619_s24 = spop %618  ;;  %s508_s28 = smul.f32 %s617_s23, %s1028_s15 }
 0x156   :  { %s490_s26 = smul.f32 1e+08, %s489_s22  ;;  %s679_s1 = smov [#allocation2]  }
 0x157   :  { %s528_s0 = smul.f32 %s619_s24, %s510_s25 }
 0x158   :  { %s491_s27 = smul.f32 1.1, %s490_s26 }
 0x159   :  { %s529_s29 = smul.f32 25000.0, %s528_s0 }
 0x15a   :  { %s509_s3 = smul.f32 10000.0, %s508_s28 }
 0x15b   :  { %s548_s30 = sadd.f32 %s529_s29, %s491_s27 }
 0x15d   :  { %s549_s6 = sadd.f32 %s548_s30, %s509_s3 }
 0x161   :  { %s621_s4 = spop %620 }
 0x162   :  { %s546_s5 = smul.f32 %s621_s4, %s1030_s19 }
 0x164   :  { %s547_s10 = smul.f32 1000.0, %s546_s5 }
 0x166   :  { %s550_s11 = sadd.f32 %s549_s6, %s547_s10 }
 0x168   :  { %552 = sst [smem:[#allocation2]] %s550_s11 }
 0x169   :  { %561 = dma.smem_to_hbm %s679_s1, 16, %s559_s9, [#allocation3]  }
 0x16a   :  { %676 = dma.done.wait [#allocation3], 16  }
 0x16b   :  { %677 = vsyncadd [#allocation3], 4294967280 }
 0x16c   :  { %566 = sfence }
 0x16d   :  { %567 = vsyncpa [#allocation3], 1 }

</bundles_post_ra>
